<compile_context>
chip_gen: v6e
topology: v6e:2x2x1
jax: 0.10.0
libtpu: 0.0.40
codegen_flags: <defaults>
</compile_context>

<pallas_src>
import functools
import math

import jax
import jax.numpy as jnp
from jax.experimental import pallas as pl
from jax.experimental.pallas import tpu as pltpu


# ---------------------------------------------------------------------------
# Kernel: one post-norm nn.TransformerEncoderLayer (ReLU FFN) on a (Bt,S,H) tile
# ---------------------------------------------------------------------------
def _bert_layer_kernel(num_heads, head_dim,
                       x_ref,
                       wqkv_ref, bqkv_ref, wo_ref, bo_ref,
                       ln1_g_ref, ln1_b_ref,
                       w1_ref, b1_ref, w2_ref, b2_ref,
                       ln2_g_ref, ln2_b_ref,
                       o_ref,
                       ctx_ref):
    Bt, S, H = x_ref.shape
    nh, hd = num_heads, head_dim
    R = Bt * S

    # f32 copy of the rows is the residual base; bf16 copy feeds the MXU.
    x = x_ref[...].astype(jnp.float32).reshape(R, H)          # (R, H) f32
    x_bf = x.astype(jnp.bfloat16)

    # ---- fused QKV projection: one MXU matmul for all rows & heads ---------
    # (1/sqrt(head_dim) is pre-folded into the Q rows — weight AND bias.)
    qkv = jnp.dot(x_bf, wqkv_ref[...],
                  preferred_element_type=jnp.float32) + bqkv_ref[...]    # (R,3H)
    qkv_bf = qkv.reshape(Bt, S, 3 * H).astype(jnp.bfloat16)              # (Bt,S,3H)

    # ---- attention: static loop over heads only, batched over Bt -----------
    # Each head's context goes straight into the (R, H) bf16 VMEM scratch so a
    # single full-width (K = H) output projection can be used afterwards.
    for h in range(nh):                                # nh is small (4..12)
        c0 = h * hd
        q_h = qkv_bf[:, :, c0:c0 + hd]                 # (Bt, S, hd) bf16
        k_h = qkv_bf[:, :, H + c0:H + c0 + hd]
        v_h = qkv_bf[:, :, 2 * H + c0:2 * H + c0 + hd]

        s = jnp.einsum('bqd,bkd->bqk', q_h, k_h,
                       preferred_element_type=jnp.float32)               # (Bt,S,S)
        s = s - jnp.max(s, axis=-1, keepdims=True)
        p = jnp.exp(s)
        p = p * pl.reciprocal(jnp.sum(p, axis=-1, keepdims=True), approx=True)
        ctx_h = jnp.einsum('bqk,bkd->bqd', p.astype(jnp.bfloat16), v_h,
                           preferred_element_type=jnp.float32)            # (Bt,S,hd)
        ctx_ref[:, c0:c0 + hd] = ctx_h.reshape(R, hd).astype(jnp.bfloat16)

    # ---- output projection: ONE (R,H) @ (H,H) matmul ------------------------
    attn = jnp.dot(ctx_ref[...], wo_ref[...],
                   preferred_element_type=jnp.float32) + bo_ref[...]      # (R, H)

    # ---- residual + LayerNorm1 (biased variance, eps=1e-5, PyTorch) ---------
    y = x + attn
    mu = jnp.mean(y, axis=-1, keepdims=True)
    var = jnp.mean((y - mu) ** 2, axis=-1, keepdims=True)
    y = (y - mu) * jax.lax.rsqrt(var + 1e-5) * ln1_g_ref[...] + ln1_b_ref[...]

    # ---- feed-forward (ReLU) -------------------------------------------------
    y_bf = y.astype(jnp.bfloat16)
    ff = jnp.dot(y_bf, w1_ref[...], preferred_element_type=jnp.float32) + b1_ref[...]
    ff = jnp.maximum(ff, 0.0).astype(jnp.bfloat16)
    ff = jnp.dot(ff, w2_ref[...], preferred_element_type=jnp.float32) + b2_ref[...]

    # ---- residual + LayerNorm2 -----------------------------------------------
    z = y + ff
    mu2 = jnp.mean(z, axis=-1, keepdims=True)
    var2 = jnp.mean((z - mu2) ** 2, axis=-1, keepdims=True)
    z = (z - mu2) * jax.lax.rsqrt(var2 + 1e-5) * ln2_g_ref[...] + ln2_b_ref[...]

    o_ref[...] = z.reshape(Bt, S, H).astype(o_ref.dtype)


# ---------------------------------------------------------------------------
# Generation-aware tiling
# ---------------------------------------------------------------------------
def _tpu_vmem_capacity_bytes():
    try:
        info = pltpu.get_tpu_info()
        cap = getattr(info, "vmem_capacity_bytes", None)
        if cap:
            return int(cap)
    except Exception:
        pass
    return 128 * 1024 * 1024            # v5e / v6e default


def _vmem_estimate_bytes(Bt, S, H, F):
    """Rough per-grid-step VMEM footprint (weights single-buffered, bf16 I/O)."""
    R = Bt * S
    weights = 2 * (H * 3 * H + H * H + 2 * H * F)      # bf16 matrices
    weights += 4 * (9 * H + F)                         # f32 biases / LN params
    io = 2 * 2 * (R * H * 2)                           # double-buffered bf16 in/out tiles
    inter = (R * 3 * H * 6                             # qkv f32 + bf16 copy
             + R * H * 2                               # ctx scratch (bf16)
             + 3 * R * H * 4                           # attn / y / z (f32)
             + R * F * 6                               # ffn hidden f32 + bf16
             + Bt * S * S * 8)                         # per-head scores + probs (f32)
    return weights + io + int(1.5 * inter)


def _choose_tiling(B, S, H, F):
    """Pick the batch tile Bt and the scoped VMEM budget for this TPU."""
    cap = _tpu_vmem_capacity_bytes()
    small_vmem = cap <= 96 * 1024 * 1024       # v7x-class: 64 MiB VMEM, 2 TCs
    target_rows = 256 if small_vmem else 512   # Bt*S rows per grid step
    budget = (40 if small_vmem else 96) * 1024 * 1024
    budget = min(budget, int(cap * 3 // 4))

    def largest_divisor_le(b, limit):
        bt = max(1, min(b, limit))
        while bt > 1 and b % bt != 0:
            bt -= 1
        return bt

    bt = largest_divisor_le(B, max(1, target_rows // max(S, 1)))
    # v7x: guarantee >= 2 grid steps so both TensorCores get work.
    if small_vmem and B >= 2:
        while bt > 1 and B // bt < 2:
            bt = largest_divisor_le(B, bt // 2)
    # Shrink until the estimated footprint fits the scoped budget.
    while bt > 1 and _vmem_estimate_bytes(bt, S, H, F) > budget:
        bt = largest_divisor_le(B, bt - 1)
    return bt, budget


# ---------------------------------------------------------------------------
# pallas_call wrapper
# ---------------------------------------------------------------------------
_WEIGHT_KEYS = ("wqkv", "bqkv", "wo", "bo", "ln1_g", "ln1_b",
                "w1", "b1", "w2", "b2", "ln2_g", "ln2_b")


def _const_spec(shape, single_buffer):
    """BlockSpec covering a whole grid-invariant array (weights / biases)."""
    nd = len(shape)
    index_map = lambda i, _nd=nd: (0,) * _nd
    if single_buffer:
        # Grid-invariant operands: double-buffering them only wastes VMEM.
        return pl.BlockSpec(shape, index_map, pipeline_mode=pl.Buffered(1))
    return pl.BlockSpec(shape, index_map)


def _encoder_layer_call(x, kp, num_heads, single_buffer_weights):
    B, S, H = x.shape
    assert H % num_heads == 0
    hd = H // num_heads
    F = kp["w1"].shape[1]
    Bt, vmem_budget = _choose_tiling(B, S, H, F)

    kernel = functools.partial(_bert_layer_kernel, num_heads, hd)
    x_spec = pl.BlockSpec((Bt, S, H), lambda i: (i, 0, 0))
    in_specs = [x_spec] + [_const_spec(kp[k].shape, single_buffer_weights)
                           for k in _WEIGHT_KEYS]

    return pl.pallas_call(
        kernel,
        out_shape=jax.ShapeDtypeStruct((B, S, H), jnp.bfloat16),
        grid=(B // Bt,),
        in_specs=in_specs,
        out_specs=x_spec,
        scratch_shapes=[pltpu.VMEM((Bt * S, H), jnp.bfloat16)],   # per-head ctx
        compiler_params=pltpu.CompilerParams(
            dimension_semantics=("parallel",),      # batch tiles are independent
            vmem_limit_bytes=vmem_budget,
        ),
    )(x, *[kp[k] for k in _WEIGHT_KEYS])


def transformer_encoder_layer(x, kp, num_heads):
    """One fused transformer encoder layer on x:(B,S,H) bf16 -> bf16."""
    try:
        return _encoder_layer_call(x, kp, num_heads, single_buffer_weights=True)
    except Exception:
        # Buffered(1) on the weight specs is a pure VMEM optimization; fall
        # back to default (double-buffered) specs if this build rejects it.
        return _encoder_layer_call(x, kp, num_heads, single_buffer_weights=False)


# ---------------------------------------------------------------------------
# Host-side parameter prep & forward
# ---------------------------------------------------------------------------
def _prep_layer_for_kernel(lp, num_heads):
    """PyTorch-layout params -> kernel layout (x @ W, bf16, scale folded)."""
    H = lp["out_proj_w"].shape[0]
    hd = H // num_heads
    scale = 1.0 / math.sqrt(hd)
    qscale = jnp.concatenate(
        [jnp.full((H,), scale, jnp.float32), jnp.ones((2 * H,), jnp.float32)])
    wqkv = (lp["in_proj_w"] * qscale[:, None]).T.astype(jnp.bfloat16)   # (H, 3H)
    bqkv = (lp["in_proj_b"].reshape(3 * H) * qscale).reshape(1, 3 * H)  # f32
    return {
        "wqkv": wqkv, "bqkv": bqkv,
        "wo": lp["out_proj_w"].T.astype(jnp.bfloat16),   # (H, H)
        "bo": lp["out_proj_b"],                          # (1, H) f32
        "ln1_g": lp["ln1_g"], "ln1_b": lp["ln1_b"],
        "w1": lp["lin1_w"].T.astype(jnp.bfloat16),       # (H, F)
        "b1": lp["lin1_b"],                              # (1, F)
        "w2": lp["lin2_w"].T.astype(jnp.bfloat16),       # (F, H)
        "b2": lp["lin2_b"],                              # (1, H)
        "ln2_g": lp["ln2_g"], "ln2_b": lp["ln2_b"],
    }


def bert_encoder_forward(tokens, segments, params, num_heads):
    # Embedding gathers + broadcast positional-row add are glue (plain JAX);
    # the hot path lives in the fused Pallas kernel.  Activations cross the
    # kernel boundary in bf16 (XLA fuses the cast into the embedding fusion).
    tok_emb = params["token_embedding"][tokens]                 # (B, S, H)
    seg_emb = params["segment_embedding"][segments]             # (B, S, H)
    S = tokens.shape[1]
    pos_row = params["positional_embedding"][:, S - 1, :]       # (1, H)
    x = (tok_emb + seg_emb + pos_row[:, None, :]).astype(jnp.bfloat16)

    # The original forward feeds the *embedding* output X to every layer
    # (X is never chained) and returns only the final layer's output, so
    # computing only the last layer yields the identical result.
    kp = _prep_layer_for_kernel(params["layers"][-1], num_heads)
    out = transformer_encoder_layer(x, kp, num_heads)
    return out.astype(jnp.float32)


def init_params(key, vocab_size, num_hidden, num_heads, num_hidden_ff,
                num_layers, max_len):
    """Parameters in PyTorch layout (transposed/scaled/cast later for kernel)."""
    H, F = num_hidden, num_hidden_ff
    keys = jax.random.split(key, 3 + num_layers)
    params = {
        "token_embedding": 0.02 * jax.random.normal(keys[0], (vocab_size, H), jnp.float32),
        "segment_embedding": 0.02 * jax.random.normal(keys[1], (2, H), jnp.float32),
        "positional_embedding": jax.random.normal(keys[2], (1, max_len, H), jnp.float32),
        "layers": [],
    }
    for l in range(num_layers):
        lk = jax.random.split(keys[3 + l], 4)
        params["layers"].append({
            "in_proj_w": 0.05 * jax.random.normal(lk[0], (3 * H, H), jnp.float32),
            "in_proj_b": jnp.zeros((1, 3 * H), jnp.float32),
            "out_proj_w": 0.05 * jax.random.normal(lk[1], (H, H), jnp.float32),
            "out_proj_b": jnp.zeros((1, H), jnp.float32),
            "ln1_g": jnp.ones((1, H), jnp.float32),
            "ln1_b": jnp.zeros((1, H), jnp.float32),
            "lin1_w": 0.05 * jax.random.normal(lk[2], (F, H), jnp.float32),
            "lin1_b": jnp.zeros((1, F), jnp.float32),
            "lin2_w": 0.05 * jax.random.normal(lk[3], (H, F), jnp.float32),
            "lin2_b": jnp.zeros((1, H), jnp.float32),
            "ln2_g": jnp.ones((1, H), jnp.float32),
            "ln2_b": jnp.zeros((1, H), jnp.float32),
        })
    return params


if __name__ == "__main__":
    # Small, deterministic configuration.
    VOCAB, H, HEADS, FF, LAYERS, MAX_LEN = 50, 32, 4, 64, 2, 16
    B, S = 2, 8

    key = jax.random.PRNGKey(0)
    kp_, kt, ks = jax.random.split(key, 3)

    params = init_params(kp_, VOCAB, H, HEADS, FF, LAYERS, MAX_LEN)
    tokens = jax.random.randint(kt, (B, S), 0, VOCAB, dtype=jnp.int32)
    segments = jax.random.randint(ks, (B, S), 0, 2, dtype=jnp.int32)

    out = bert_encoder_forward(tokens, segments, params, num_heads=HEADS)
    jax.block_until_ready(out)
    assert out.shape == (B, S, H)
    assert out.dtype == jnp.float32
    print("KERNEL_OK")
</pallas_src>

<mosaic_0001>
module attributes {stable_mosaic.version = 11 : i64} {
  func.func @_bert_layer_kernel(%arg0: i32, %arg1: memref<2x8x32xbf16, #tpu.memory_space<vmem>>, %arg2: memref<32x96xbf16, #tpu.memory_space<vmem>>, %arg3: memref<1x96xf32, #tpu.memory_space<vmem>>, %arg4: memref<32x32xbf16, #tpu.memory_space<vmem>>, %arg5: memref<1x32xf32, #tpu.memory_space<vmem>>, %arg6: memref<1x32xf32, #tpu.memory_space<vmem>>, %arg7: memref<1x32xf32, #tpu.memory_space<vmem>>, %arg8: memref<32x64xbf16, #tpu.memory_space<vmem>>, %arg9: memref<1x64xf32, #tpu.memory_space<vmem>>, %arg10: memref<64x32xbf16, #tpu.memory_space<vmem>>, %arg11: memref<1x32xf32, #tpu.memory_space<vmem>>, %arg12: memref<1x32xf32, #tpu.memory_space<vmem>>, %arg13: memref<1x32xf32, #tpu.memory_space<vmem>>, %arg14: memref<2x8x32xbf16, #tpu.memory_space<vmem>>, %arg15: memref<16x32xbf16, #tpu.memory_space<vmem>>) attributes {dimension_semantics = [#tpu.dimension_semantics<parallel>], iteration_bounds = array<i64: 1>, scalar_prefetch = 0 : i64, scratch_operands = 1 : i64, tpu.core_type = #tpu.core_type<tc>, window_params = [{transform_indices = @transform_0, window_bounds = array<i64: 2, 8, 32>}, {pipeline_mode = #tpu.pipeline_mode<synchronous>, transform_indices = @transform_1, window_bounds = array<i64: 32, 96>}, {pipeline_mode = #tpu.pipeline_mode<synchronous>, transform_indices = @transform_2, window_bounds = array<i64: 1, 96>}, {pipeline_mode = #tpu.pipeline_mode<synchronous>, transform_indices = @transform_3, window_bounds = array<i64: 32, 32>}, {pipeline_mode = #tpu.pipeline_mode<synchronous>, transform_indices = @transform_4, window_bounds = array<i64: 1, 32>}, {pipeline_mode = #tpu.pipeline_mode<synchronous>, transform_indices = @transform_5, window_bounds = array<i64: 1, 32>}, {pipeline_mode = #tpu.pipeline_mode<synchronous>, transform_indices = @transform_6, window_bounds = array<i64: 1, 32>}, {pipeline_mode = #tpu.pipeline_mode<synchronous>, transform_indices = @transform_7, window_bounds = array<i64: 32, 64>}, {pipeline_mode = #tpu.pipeline_mode<synchronous>, transform_indices = @transform_8, window_bounds = array<i64: 1, 64>}, {pipeline_mode = #tpu.pipeline_mode<synchronous>, transform_indices = @transform_9, window_bounds = array<i64: 64, 32>}, {pipeline_mode = #tpu.pipeline_mode<synchronous>, transform_indices = @transform_10, window_bounds = array<i64: 1, 32>}, {pipeline_mode = #tpu.pipeline_mode<synchronous>, transform_indices = @transform_11, window_bounds = array<i64: 1, 32>}, {pipeline_mode = #tpu.pipeline_mode<synchronous>, transform_indices = @transform_12, window_bounds = array<i64: 1, 32>}, {transform_indices = @transform_13, window_bounds = array<i64: 2, 8, 32>}]} {
    %c0 = arith.constant 0 : index
    %c0_0 = arith.constant 0 : index
    %c0_1 = arith.constant 0 : index
    %0 = vector.load %arg1[%c0, %c0_0, %c0_1] : memref<2x8x32xbf16, #tpu.memory_space<vmem>>, vector<2x8x32xbf16>
    %1 = arith.extf %0 : vector<2x8x32xbf16> to vector<2x8x32xf32>
    %2 = vector.shape_cast %1 : vector<2x8x32xf32> to vector<16x32xf32>
    %3 = arith.truncf %2 : vector<16x32xf32> to vector<16x32xbf16>
    %c0_2 = arith.constant 0 : index
    %c0_3 = arith.constant 0 : index
    %4 = vector.load %arg2[%c0_2, %c0_3] : memref<32x96xbf16, #tpu.memory_space<vmem>>, vector<32x96xbf16>
    %cst = arith.constant dense<0.000000e+00> : vector<16x96xf32>
    %5 = tpu.matmul %3, %4, %cst {dimension_numbers = #tpu.dot_dimension_numbers<[1], [0], [0], [1], [0, 0, 1, 1], [], []>} : vector<16x32xbf16>, vector<32x96xbf16>, vector<16x96xf32> -> vector<16x96xf32>
    %c0_4 = arith.constant 0 : index
    %c0_5 = arith.constant 0 : index
    %6 = vector.load %arg3[%c0_4, %c0_5] : memref<1x96xf32, #tpu.memory_space<vmem>>, vector<1x96xf32>
    %7 = vector.broadcast %6 : vector<1x96xf32> to vector<16x96xf32>
    %8 = arith.addf %5, %7 : vector<16x96xf32>
    %9 = vector.shape_cast %8 : vector<16x96xf32> to vector<2x8x96xf32>
    %10 = arith.truncf %9 : vector<2x8x96xf32> to vector<2x8x96xbf16>
    %11 = vector.extract_strided_slice %10 {offsets = [0, 0, 0], sizes = [2, 8, 8], strides = [1, 1, 1]} : vector<2x8x96xbf16> to vector<2x8x8xbf16>
    %12 = vector.extract_strided_slice %10 {offsets = [0, 0, 32], sizes = [2, 8, 8], strides = [1, 1, 1]} : vector<2x8x96xbf16> to vector<2x8x8xbf16>
    %13 = vector.extract_strided_slice %10 {offsets = [0, 0, 64], sizes = [2, 8, 8], strides = [1, 1, 1]} : vector<2x8x96xbf16> to vector<2x8x8xbf16>
    "tpu.trace_start"() <{level = 10 : i32, message = "bqd,bkd->bqk"}> : () -> ()
    %cst_6 = arith.constant dense<0.000000e+00> : vector<2x8x8xf32>
    %14 = tpu.matmul %11, %12, %cst_6 {dimension_numbers = #tpu.dot_dimension_numbers<[2], [2], [1], [1], [0, 0, 0, 1, 1, 1], [0], [0]>} : vector<2x8x8xbf16>, vector<2x8x8xbf16>, vector<2x8x8xf32> -> vector<2x8x8xf32>
    "tpu.trace_stop"() : () -> ()
    %cst_7 = arith.constant dense<0xFF800000> : vector<2x8xf32>
    %15 = vector.multi_reduction <maximumf>, %14, %cst_7 [2] : vector<2x8x8xf32> to vector<2x8xf32>
    %16 = vector.shape_cast %15 : vector<2x8xf32> to vector<2x8x1xf32>
    %17 = vector.broadcast %16 : vector<2x8x1xf32> to vector<2x8x8xf32>
    %18 = arith.subf %14, %17 : vector<2x8x8xf32>
    %19 = math.exp %18 : vector<2x8x8xf32>
    %cst_8 = arith.constant dense<0.000000e+00> : vector<2x8xf32>
    %20 = vector.multi_reduction <add>, %19, %cst_8 [2] : vector<2x8x8xf32> to vector<2x8xf32>
    %21 = vector.shape_cast %20 : vector<2x8xf32> to vector<2x8x1xf32>
    %22 = tpu.reciprocal %21 {approx = true} : vector<2x8x1xf32> -> vector<2x8x1xf32>
    %23 = vector.broadcast %22 : vector<2x8x1xf32> to vector<2x8x8xf32>
    %24 = arith.mulf %19, %23 : vector<2x8x8xf32>
    %25 = arith.truncf %24 : vector<2x8x8xf32> to vector<2x8x8xbf16>
    "tpu.trace_start"() <{level = 10 : i32, message = "bqk,bkd->bqd"}> : () -> ()
    %cst_9 = arith.constant dense<0.000000e+00> : vector<2x8x8xf32>
    %26 = tpu.matmul %25, %13, %cst_9 {dimension_numbers = #tpu.dot_dimension_numbers<[2], [1], [1], [2], [0, 0, 0, 1, 1, 2], [0], [0]>} : vector<2x8x8xbf16>, vector<2x8x8xbf16>, vector<2x8x8xf32> -> vector<2x8x8xf32>
    "tpu.trace_stop"() : () -> ()
    %27 = vector.shape_cast %26 : vector<2x8x8xf32> to vector<16x8xf32>
    %28 = arith.truncf %27 : vector<16x8xf32> to vector<16x8xbf16>
    %c0_10 = arith.constant 0 : index
    %c0_11 = arith.constant 0 : index
    %29 = vector.load %arg15[%c0_10, %c0_11] : memref<16x32xbf16, #tpu.memory_space<vmem>>, vector<16x8xbf16>
    tpu.vector_store %arg15[%c0_10, %c0_11], %28 {strides = array<i32>} : memref<16x32xbf16, #tpu.memory_space<vmem>>, vector<16x8xbf16>,
    %30 = vector.extract_strided_slice %10 {offsets = [0, 0, 8], sizes = [2, 8, 8], strides = [1, 1, 1]} : vector<2x8x96xbf16> to vector<2x8x8xbf16>
    %31 = vector.extract_strided_slice %10 {offsets = [0, 0, 40], sizes = [2, 8, 8], strides = [1, 1, 1]} : vector<2x8x96xbf16> to vector<2x8x8xbf16>
    %32 = vector.extract_strided_slice %10 {offsets = [0, 0, 72], sizes = [2, 8, 8], strides = [1, 1, 1]} : vector<2x8x96xbf16> to vector<2x8x8xbf16>
    "tpu.trace_start"() <{level = 10 : i32, message = "bqd,bkd->bqk"}> : () -> ()
    %cst_12 = arith.constant dense<0.000000e+00> : vector<2x8x8xf32>
    %33 = tpu.matmul %30, %31, %cst_12 {dimension_numbers = #tpu.dot_dimension_numbers<[2], [2], [1], [1], [0, 0, 0, 1, 1, 1], [0], [0]>} : vector<2x8x8xbf16>, vector<2x8x8xbf16>, vector<2x8x8xf32> -> vector<2x8x8xf32>
    "tpu.trace_stop"() : () -> ()
    %cst_13 = arith.constant dense<0xFF800000> : vector<2x8xf32>
    %34 = vector.multi_reduction <maximumf>, %33, %cst_13 [2] : vector<2x8x8xf32> to vector<2x8xf32>
    %35 = vector.shape_cast %34 : vector<2x8xf32> to vector<2x8x1xf32>
    %36 = vector.broadcast %35 : vector<2x8x1xf32> to vector<2x8x8xf32>
    %37 = arith.subf %33, %36 : vector<2x8x8xf32>
    %38 = math.exp %37 : vector<2x8x8xf32>
    %cst_14 = arith.constant dense<0.000000e+00> : vector<2x8xf32>
    %39 = vector.multi_reduction <add>, %38, %cst_14 [2] : vector<2x8x8xf32> to vector<2x8xf32>
    %40 = vector.shape_cast %39 : vector<2x8xf32> to vector<2x8x1xf32>
    %41 = tpu.reciprocal %40 {approx = true} : vector<2x8x1xf32> -> vector<2x8x1xf32>
    %42 = vector.broadcast %41 : vector<2x8x1xf32> to vector<2x8x8xf32>
    %43 = arith.mulf %38, %42 : vector<2x8x8xf32>
    %44 = arith.truncf %43 : vector<2x8x8xf32> to vector<2x8x8xbf16>
    "tpu.trace_start"() <{level = 10 : i32, message = "bqk,bkd->bqd"}> : () -> ()
    %cst_15 = arith.constant dense<0.000000e+00> : vector<2x8x8xf32>
    %45 = tpu.matmul %44, %32, %cst_15 {dimension_numbers = #tpu.dot_dimension_numbers<[2], [1], [1], [2], [0, 0, 0, 1, 1, 2], [0], [0]>} : vector<2x8x8xbf16>, vector<2x8x8xbf16>, vector<2x8x8xf32> -> vector<2x8x8xf32>
    "tpu.trace_stop"() : () -> ()
    %46 = vector.shape_cast %45 : vector<2x8x8xf32> to vector<16x8xf32>
    %47 = arith.truncf %46 : vector<16x8xf32> to vector<16x8xbf16>
    %c0_16 = arith.constant 0 : index
    %c8 = arith.constant 8 : index
    %48 = vector.load %arg15[%c0_16, %c8] : memref<16x32xbf16, #tpu.memory_space<vmem>>, vector<16x8xbf16>
    tpu.vector_store %arg15[%c0_16, %c8], %47 {strides = array<i32>} : memref<16x32xbf16, #tpu.memory_space<vmem>>, vector<16x8xbf16>,
    %49 = vector.extract_strided_slice %10 {offsets = [0, 0, 16], sizes = [2, 8, 8], strides = [1, 1, 1]} : vector<2x8x96xbf16> to vector<2x8x8xbf16>
    %50 = vector.extract_strided_slice %10 {offsets = [0, 0, 48], sizes = [2, 8, 8], strides = [1, 1, 1]} : vector<2x8x96xbf16> to vector<2x8x8xbf16>
    %51 = vector.extract_strided_slice %10 {offsets = [0, 0, 80], sizes = [2, 8, 8], strides = [1, 1, 1]} : vector<2x8x96xbf16> to vector<2x8x8xbf16>
    "tpu.trace_start"() <{level = 10 : i32, message = "bqd,bkd->bqk"}> : () -> ()
    %cst_17 = arith.constant dense<0.000000e+00> : vector<2x8x8xf32>
    %52 = tpu.matmul %49, %50, %cst_17 {dimension_numbers = #tpu.dot_dimension_numbers<[2], [2], [1], [1], [0, 0, 0, 1, 1, 1], [0], [0]>} : vector<2x8x8xbf16>, vector<2x8x8xbf16>, vector<2x8x8xf32> -> vector<2x8x8xf32>
    "tpu.trace_stop"() : () -> ()
    %cst_18 = arith.constant dense<0xFF800000> : vector<2x8xf32>
    %53 = vector.multi_reduction <maximumf>, %52, %cst_18 [2] : vector<2x8x8xf32> to vector<2x8xf32>
    %54 = vector.shape_cast %53 : vector<2x8xf32> to vector<2x8x1xf32>
    %55 = vector.broadcast %54 : vector<2x8x1xf32> to vector<2x8x8xf32>
    %56 = arith.subf %52, %55 : vector<2x8x8xf32>
    %57 = math.exp %56 : vector<2x8x8xf32>
    %cst_19 = arith.constant dense<0.000000e+00> : vector<2x8xf32>
    %58 = vector.multi_reduction <add>, %57, %cst_19 [2] : vector<2x8x8xf32> to vector<2x8xf32>
    %59 = vector.shape_cast %58 : vector<2x8xf32> to vector<2x8x1xf32>
    %60 = tpu.reciprocal %59 {approx = true} : vector<2x8x1xf32> -> vector<2x8x1xf32>
    %61 = vector.broadcast %60 : vector<2x8x1xf32> to vector<2x8x8xf32>
    %62 = arith.mulf %57, %61 : vector<2x8x8xf32>
    %63 = arith.truncf %62 : vector<2x8x8xf32> to vector<2x8x8xbf16>
    "tpu.trace_start"() <{level = 10 : i32, message = "bqk,bkd->bqd"}> : () -> ()
    %cst_20 = arith.constant dense<0.000000e+00> : vector<2x8x8xf32>
    %64 = tpu.matmul %63, %51, %cst_20 {dimension_numbers = #tpu.dot_dimension_numbers<[2], [1], [1], [2], [0, 0, 0, 1, 1, 2], [0], [0]>} : vector<2x8x8xbf16>, vector<2x8x8xbf16>, vector<2x8x8xf32> -> vector<2x8x8xf32>
    "tpu.trace_stop"() : () -> ()
    %65 = vector.shape_cast %64 : vector<2x8x8xf32> to vector<16x8xf32>
    %66 = arith.truncf %65 : vector<16x8xf32> to vector<16x8xbf16>
    %c0_21 = arith.constant 0 : index
    %c16 = arith.constant 16 : index
    %67 = vector.load %arg15[%c0_21, %c16] : memref<16x32xbf16, #tpu.memory_space<vmem>>, vector<16x8xbf16>
    tpu.vector_store %arg15[%c0_21, %c16], %66 {strides = array<i32>} : memref<16x32xbf16, #tpu.memory_space<vmem>>, vector<16x8xbf16>,
    %68 = vector.extract_strided_slice %10 {offsets = [0, 0, 24], sizes = [2, 8, 8], strides = [1, 1, 1]} : vector<2x8x96xbf16> to vector<2x8x8xbf16>
    %69 = vector.extract_strided_slice %10 {offsets = [0, 0, 56], sizes = [2, 8, 8], strides = [1, 1, 1]} : vector<2x8x96xbf16> to vector<2x8x8xbf16>
    %70 = vector.extract_strided_slice %10 {offsets = [0, 0, 88], sizes = [2, 8, 8], strides = [1, 1, 1]} : vector<2x8x96xbf16> to vector<2x8x8xbf16>
    "tpu.trace_start"() <{level = 10 : i32, message = "bqd,bkd->bqk"}> : () -> ()
    %cst_22 = arith.constant dense<0.000000e+00> : vector<2x8x8xf32>
    %71 = tpu.matmul %68, %69, %cst_22 {dimension_numbers = #tpu.dot_dimension_numbers<[2], [2], [1], [1], [0, 0, 0, 1, 1, 1], [0], [0]>} : vector<2x8x8xbf16>, vector<2x8x8xbf16>, vector<2x8x8xf32> -> vector<2x8x8xf32>
    "tpu.trace_stop"() : () -> ()
    %cst_23 = arith.constant dense<0xFF800000> : vector<2x8xf32>
    %72 = vector.multi_reduction <maximumf>, %71, %cst_23 [2] : vector<2x8x8xf32> to vector<2x8xf32>
    %73 = vector.shape_cast %72 : vector<2x8xf32> to vector<2x8x1xf32>
    %74 = vector.broadcast %73 : vector<2x8x1xf32> to vector<2x8x8xf32>
    %75 = arith.subf %71, %74 : vector<2x8x8xf32>
    %76 = math.exp %75 : vector<2x8x8xf32>
    %cst_24 = arith.constant dense<0.000000e+00> : vector<2x8xf32>
    %77 = vector.multi_reduction <add>, %76, %cst_24 [2] : vector<2x8x8xf32> to vector<2x8xf32>
    %78 = vector.shape_cast %77 : vector<2x8xf32> to vector<2x8x1xf32>
    %79 = tpu.reciprocal %78 {approx = true} : vector<2x8x1xf32> -> vector<2x8x1xf32>
    %80 = vector.broadcast %79 : vector<2x8x1xf32> to vector<2x8x8xf32>
    %81 = arith.mulf %76, %80 : vector<2x8x8xf32>
    %82 = arith.truncf %81 : vector<2x8x8xf32> to vector<2x8x8xbf16>
    "tpu.trace_start"() <{level = 10 : i32, message = "bqk,bkd->bqd"}> : () -> ()
    %cst_25 = arith.constant dense<0.000000e+00> : vector<2x8x8xf32>
    %83 = tpu.matmul %82, %70, %cst_25 {dimension_numbers = #tpu.dot_dimension_numbers<[2], [1], [1], [2], [0, 0, 0, 1, 1, 2], [0], [0]>} : vector<2x8x8xbf16>, vector<2x8x8xbf16>, vector<2x8x8xf32> -> vector<2x8x8xf32>
    "tpu.trace_stop"() : () -> ()
    %84 = vector.shape_cast %83 : vector<2x8x8xf32> to vector<16x8xf32>
    %85 = arith.truncf %84 : vector<16x8xf32> to vector<16x8xbf16>
    %c0_26 = arith.constant 0 : index
    %c24 = arith.constant 24 : index
    %86 = vector.load %arg15[%c0_26, %c24] : memref<16x32xbf16, #tpu.memory_space<vmem>>, vector<16x8xbf16>
    tpu.vector_store %arg15[%c0_26, %c24], %85 {strides = array<i32>} : memref<16x32xbf16, #tpu.memory_space<vmem>>, vector<16x8xbf16>,
    %c0_27 = arith.constant 0 : index
    %c0_28 = arith.constant 0 : index
    %87 = vector.load %arg15[%c0_27, %c0_28] : memref<16x32xbf16, #tpu.memory_space<vmem>>, vector<16x32xbf16>
    %c0_29 = arith.constant 0 : index
    %c0_30 = arith.constant 0 : index
    %88 = vector.load %arg4[%c0_29, %c0_30] : memref<32x32xbf16, #tpu.memory_space<vmem>>, vector<32x32xbf16>
    %cst_31 = arith.constant dense<0.000000e+00> : vector<16x32xf32>
    %89 = tpu.matmul %87, %88, %cst_31 {dimension_numbers = #tpu.dot_dimension_numbers<[1], [0], [0], [1], [0, 0, 1, 1], [], []>} : vector<16x32xbf16>, vector<32x32xbf16>, vector<16x32xf32> -> vector<16x32xf32>
    %c0_32 = arith.constant 0 : index
    %c0_33 = arith.constant 0 : index
    %90 = vector.load %arg5[%c0_32, %c0_33] : memref<1x32xf32, #tpu.memory_space<vmem>>, vector<1x32xf32>
    %91 = vector.broadcast %90 : vector<1x32xf32> to vector<16x32xf32>
    %92 = arith.addf %89, %91 : vector<16x32xf32>
    %93 = arith.addf %2, %92 : vector<16x32xf32>
    %cst_34 = arith.constant dense<0.000000e+00> : vector<16xf32>
    %94 = vector.multi_reduction <add>, %93, %cst_34 [1] : vector<16x32xf32> to vector<16xf32>
    %95 = vector.shape_cast %94 : vector<16xf32> to vector<16x1xf32>
    %cst_35 = arith.constant 3.200000e+01 : f32
    %96 = vector.broadcast %cst_35 : f32 to vector<16x1xf32>
    %97 = arith.divf %95, %96 : vector<16x1xf32>
    %98 = vector.broadcast %97 : vector<16x1xf32> to vector<16x32xf32>
    %99 = arith.subf %93, %98 : vector<16x32xf32>
    %100 = arith.mulf %99, %99 : vector<16x32xf32>
    %cst_36 = arith.constant dense<0.000000e+00> : vector<16xf32>
    %101 = vector.multi_reduction <add>, %100, %cst_36 [1] : vector<16x32xf32> to vector<16xf32>
    %102 = vector.shape_cast %101 : vector<16xf32> to vector<16x1xf32>
    %cst_37 = arith.constant 3.200000e+01 : f32
    %103 = vector.broadcast %cst_37 : f32 to vector<16x1xf32>
    %104 = arith.divf %102, %103 : vector<16x1xf32>
    %105 = vector.broadcast %97 : vector<16x1xf32> to vector<16x32xf32>
    %106 = arith.subf %93, %105 : vector<16x32xf32>
    %cst_38 = arith.constant 9.99999974E-6 : f32
    %107 = vector.broadcast %cst_38 : f32 to vector<16x1xf32>
    %108 = arith.addf %104, %107 : vector<16x1xf32>
    %109 = math.rsqrt %108 : vector<16x1xf32>
    %110 = vector.broadcast %109 : vector<16x1xf32> to vector<16x32xf32>
    %111 = arith.mulf %106, %110 : vector<16x32xf32>
    %c0_39 = arith.constant 0 : index
    %c0_40 = arith.constant 0 : index
    %112 = vector.load %arg6[%c0_39, %c0_40] : memref<1x32xf32, #tpu.memory_space<vmem>>, vector<1x32xf32>
    %113 = vector.broadcast %112 : vector<1x32xf32> to vector<16x32xf32>
    %114 = arith.mulf %111, %113 : vector<16x32xf32>
    %c0_41 = arith.constant 0 : index
    %c0_42 = arith.constant 0 : index
    %115 = vector.load %arg7[%c0_41, %c0_42] : memref<1x32xf32, #tpu.memory_space<vmem>>, vector<1x32xf32>
    %116 = vector.broadcast %115 : vector<1x32xf32> to vector<16x32xf32>
    %117 = arith.addf %114, %116 : vector<16x32xf32>
    %118 = arith.truncf %117 : vector<16x32xf32> to vector<16x32xbf16>
    %c0_43 = arith.constant 0 : index
    %c0_44 = arith.constant 0 : index
    %119 = vector.load %arg8[%c0_43, %c0_44] : memref<32x64xbf16, #tpu.memory_space<vmem>>, vector<32x64xbf16>
    %cst_45 = arith.constant dense<0.000000e+00> : vector<16x64xf32>
    %120 = tpu.matmul %118, %119, %cst_45 {dimension_numbers = #tpu.dot_dimension_numbers<[1], [0], [0], [1], [0, 0, 1, 1], [], []>} : vector<16x32xbf16>, vector<32x64xbf16>, vector<16x64xf32> -> vector<16x64xf32>
    %c0_46 = arith.constant 0 : index
    %c0_47 = arith.constant 0 : index
    %121 = vector.load %arg9[%c0_46, %c0_47] : memref<1x64xf32, #tpu.memory_space<vmem>>, vector<1x64xf32>
    %122 = vector.broadcast %121 : vector<1x64xf32> to vector<16x64xf32>
    %123 = arith.addf %120, %122 : vector<16x64xf32>
    %cst_48 = arith.constant 0.000000e+00 : f32
    %124 = vector.broadcast %cst_48 : f32 to vector<16x64xf32>
    %125 = arith.maximumf %123, %124 : vector<16x64xf32>
    %126 = arith.truncf %125 : vector<16x64xf32> to vector<16x64xbf16>
    %c0_49 = arith.constant 0 : index
    %c0_50 = arith.constant 0 : index
    %127 = vector.load %arg10[%c0_49, %c0_50] : memref<64x32xbf16, #tpu.memory_space<vmem>>, vector<64x32xbf16>
    %cst_51 = arith.constant dense<0.000000e+00> : vector<16x32xf32>
    %128 = tpu.matmul %126, %127, %cst_51 {dimension_numbers = #tpu.dot_dimension_numbers<[1], [0], [0], [1], [0, 0, 1, 1], [], []>} : vector<16x64xbf16>, vector<64x32xbf16>, vector<16x32xf32> -> vector<16x32xf32>
    %c0_52 = arith.constant 0 : index
    %c0_53 = arith.constant 0 : index
    %129 = vector.load %arg11[%c0_52, %c0_53] : memref<1x32xf32, #tpu.memory_space<vmem>>, vector<1x32xf32>
    %130 = vector.broadcast %129 : vector<1x32xf32> to vector<16x32xf32>
    %131 = arith.addf %128, %130 : vector<16x32xf32>
    %132 = arith.addf %117, %131 : vector<16x32xf32>
    %cst_54 = arith.constant dense<0.000000e+00> : vector<16xf32>
    %133 = vector.multi_reduction <add>, %132, %cst_54 [1] : vector<16x32xf32> to vector<16xf32>
    %134 = vector.shape_cast %133 : vector<16xf32> to vector<16x1xf32>
    %cst_55 = arith.constant 3.200000e+01 : f32
    %135 = vector.broadcast %cst_55 : f32 to vector<16x1xf32>
    %136 = arith.divf %134, %135 : vector<16x1xf32>
    %137 = vector.broadcast %136 : vector<16x1xf32> to vector<16x32xf32>
    %138 = arith.subf %132, %137 : vector<16x32xf32>
    %139 = arith.mulf %138, %138 : vector<16x32xf32>
    %cst_56 = arith.constant dense<0.000000e+00> : vector<16xf32>
    %140 = vector.multi_reduction <add>, %139, %cst_56 [1] : vector<16x32xf32> to vector<16xf32>
    %141 = vector.shape_cast %140 : vector<16xf32> to vector<16x1xf32>
    %cst_57 = arith.constant 3.200000e+01 : f32
    %142 = vector.broadcast %cst_57 : f32 to vector<16x1xf32>
    %143 = arith.divf %141, %142 : vector<16x1xf32>
    %144 = vector.broadcast %136 : vector<16x1xf32> to vector<16x32xf32>
    %145 = arith.subf %132, %144 : vector<16x32xf32>
    %cst_58 = arith.constant 9.99999974E-6 : f32
    %146 = vector.broadcast %cst_58 : f32 to vector<16x1xf32>
    %147 = arith.addf %143, %146 : vector<16x1xf32>
    %148 = math.rsqrt %147 : vector<16x1xf32>
    %149 = vector.broadcast %148 : vector<16x1xf32> to vector<16x32xf32>
    %150 = arith.mulf %145, %149 : vector<16x32xf32>
    %c0_59 = arith.constant 0 : index
    %c0_60 = arith.constant 0 : index
    %151 = vector.load %arg12[%c0_59, %c0_60] : memref<1x32xf32, #tpu.memory_space<vmem>>, vector<1x32xf32>
    %152 = vector.broadcast %151 : vector<1x32xf32> to vector<16x32xf32>
    %153 = arith.mulf %150, %152 : vector<16x32xf32>
    %c0_61 = arith.constant 0 : index
    %c0_62 = arith.constant 0 : index
    %154 = vector.load %arg13[%c0_61, %c0_62] : memref<1x32xf32, #tpu.memory_space<vmem>>, vector<1x32xf32>
    %155 = vector.broadcast %154 : vector<1x32xf32> to vector<16x32xf32>
    %156 = arith.addf %153, %155 : vector<16x32xf32>
    %157 = vector.shape_cast %156 : vector<16x32xf32> to vector<2x8x32xf32>
    %158 = arith.truncf %157 : vector<2x8x32xf32> to vector<2x8x32xbf16>
    %c0_63 = arith.constant 0 : index
    %c0_64 = arith.constant 0 : index
    %c0_65 = arith.constant 0 : index
    %159 = vector.load %arg14[%c0_63, %c0_64, %c0_65] : memref<2x8x32xbf16, #tpu.memory_space<vmem>>, vector<2x8x32xbf16>
    tpu.vector_store %arg14[%c0_63, %c0_64, %c0_65], %158 {strides = array<i32>} : memref<2x8x32xbf16, #tpu.memory_space<vmem>>, vector<2x8x32xbf16>,
    return
  }
  func.func @transform_0(%arg0: i32) -> (i32, i32, i32) {
    %c0_i32 = arith.constant 0 : i32
    %c0_i32_0 = arith.constant 0 : i32
    %c0_i32_1 = arith.constant 0 : i32
    return %arg0, %c0_i32, %c0_i32_0 : i32, i32, i32
  }
  func.func @transform_1(%arg0: i32) -> (i32, i32) {
    %c0_i32 = arith.constant 0 : i32
    %c0_i32_0 = arith.constant 0 : i32
    %c0_i32_1 = arith.constant 0 : i32
    return %c0_i32, %c0_i32_0 : i32, i32
  }
  func.func @transform_2(%arg0: i32) -> (i32, i32) {
    %c0_i32 = arith.constant 0 : i32
    %c0_i32_0 = arith.constant 0 : i32
    %c0_i32_1 = arith.constant 0 : i32
    return %c0_i32, %c0_i32_0 : i32, i32
  }
  func.func @transform_3(%arg0: i32) -> (i32, i32) {
    %c0_i32 = arith.constant 0 : i32
    %c0_i32_0 = arith.constant 0 : i32
    %c0_i32_1 = arith.constant 0 : i32
    return %c0_i32, %c0_i32_0 : i32, i32
  }
  func.func @transform_4(%arg0: i32) -> (i32, i32) {
    %c0_i32 = arith.constant 0 : i32
    %c0_i32_0 = arith.constant 0 : i32
    %c0_i32_1 = arith.constant 0 : i32
    return %c0_i32, %c0_i32_0 : i32, i32
  }
  func.func @transform_5(%arg0: i32) -> (i32, i32) {
    %c0_i32 = arith.constant 0 : i32
    %c0_i32_0 = arith.constant 0 : i32
    %c0_i32_1 = arith.constant 0 : i32
    return %c0_i32, %c0_i32_0 : i32, i32
  }
  func.func @transform_6(%arg0: i32) -> (i32, i32) {
    %c0_i32 = arith.constant 0 : i32
    %c0_i32_0 = arith.constant 0 : i32
    %c0_i32_1 = arith.constant 0 : i32
    return %c0_i32, %c0_i32_0 : i32, i32
  }
  func.func @transform_7(%arg0: i32) -> (i32, i32) {
    %c0_i32 = arith.constant 0 : i32
    %c0_i32_0 = arith.constant 0 : i32
    %c0_i32_1 = arith.constant 0 : i32
    return %c0_i32, %c0_i32_0 : i32, i32
  }
  func.func @transform_8(%arg0: i32) -> (i32, i32) {
    %c0_i32 = arith.constant 0 : i32
    %c0_i32_0 = arith.constant 0 : i32
    %c0_i32_1 = arith.constant 0 : i32
    return %c0_i32, %c0_i32_0 : i32, i32
  }
  func.func @transform_9(%arg0: i32) -> (i32, i32) {
    %c0_i32 = arith.constant 0 : i32
    %c0_i32_0 = arith.constant 0 : i32
    %c0_i32_1 = arith.constant 0 : i32
    return %c0_i32, %c0_i32_0 : i32, i32
  }
  func.func @transform_10(%arg0: i32) -> (i32, i32) {
    %c0_i32 = arith.constant 0 : i32
    %c0_i32_0 = arith.constant 0 : i32
    %c0_i32_1 = arith.constant 0 : i32
    return %c0_i32, %c0_i32_0 : i32, i32
  }
  func.func @transform_11(%arg0: i32) -> (i32, i32) {
    %c0_i32 = arith.constant 0 : i32
    %c0_i32_0 = arith.constant 0 : i32
    %c0_i32_1 = arith.constant 0 : i32
    return %c0_i32, %c0_i32_0 : i32, i32
  }
  func.func @transform_12(%arg0: i32) -> (i32, i32) {
    %c0_i32 = arith.constant 0 : i32
    %c0_i32_0 = arith.constant 0 : i32
    %c0_i32_1 = arith.constant 0 : i32
    return %c0_i32, %c0_i32_0 : i32, i32
  }
  func.func @transform_13(%arg0: i32) -> (i32, i32, i32) {
    %c0_i32 = arith.constant 0 : i32
    %c0_i32_0 = arith.constant 0 : i32
    %c0_i32_1 = arith.constant 0 : i32
    return %arg0, %c0_i32, %c0_i32_0 : i32, i32, i32
  }
}

module attributes {stable_mosaic.version = 11 : i64} {
  func.func @_bert_layer_kernel(%arg0: i32, %arg1: memref<2x8x32xbf16, #tpu.memory_space<vmem>>, %arg2: memref<32x96xbf16, #tpu.memory_space<vmem>>, %arg3: memref<1x96xf32, #tpu.memory_space<vmem>>, %arg4: memref<32x32xbf16, #tpu.memory_space<vmem>>, %arg5: memref<1x32xf32, #tpu.memory_space<vmem>>, %arg6: memref<1x32xf32, #tpu.memory_space<vmem>>, %arg7: memref<1x32xf32, #tpu.memory_space<vmem>>, %arg8: memref<32x64xbf16, #tpu.memory_space<vmem>>, %arg9: memref<1x64xf32, #tpu.memory_space<vmem>>, %arg10: memref<64x32xbf16, #tpu.memory_space<vmem>>, %arg11: memref<1x32xf32, #tpu.memory_space<vmem>>, %arg12: memref<1x32xf32, #tpu.memory_space<vmem>>, %arg13: memref<1x32xf32, #tpu.memory_space<vmem>>, %arg14: memref<2x8x32xbf16, #tpu.memory_space<vmem>>, %arg15: memref<16x32xbf16, #tpu.memory_space<vmem>>) attributes {dimension_semantics = [#tpu.dimension_semantics<parallel>], iteration_bounds = array<i64: 1>, scalar_prefetch = 0 : i64, scratch_operands = 1 : i64, tpu.core_type = #tpu.core_type<tc>, window_params = [{transform_indices = @transform_0, window_bounds = array<i64: 2, 8, 32>}, {pipeline_mode = #tpu.pipeline_mode<synchronous>, transform_indices = @transform_1, window_bounds = array<i64: 32, 96>}, {pipeline_mode = #tpu.pipeline_mode<synchronous>, transform_indices = @transform_2, window_bounds = array<i64: 1, 96>}, {pipeline_mode = #tpu.pipeline_mode<synchronous>, transform_indices = @transform_3, window_bounds = array<i64: 32, 32>}, {pipeline_mode = #tpu.pipeline_mode<synchronous>, transform_indices = @transform_4, window_bounds = array<i64: 1, 32>}, {pipeline_mode = #tpu.pipeline_mode<synchronous>, transform_indices = @transform_5, window_bounds = array<i64: 1, 32>}, {pipeline_mode = #tpu.pipeline_mode<synchronous>, transform_indices = @transform_6, window_bounds = array<i64: 1, 32>}, {pipeline_mode = #tpu.pipeline_mode<synchronous>, transform_indices = @transform_7, window_bounds = array<i64: 32, 64>}, {pipeline_mode = #tpu.pipeline_mode<synchronous>, transform_indices = @transform_8, window_bounds = array<i64: 1, 64>}, {pipeline_mode = #tpu.pipeline_mode<synchronous>, transform_indices = @transform_9, window_bounds = array<i64: 64, 32>}, {pipeline_mode = #tpu.pipeline_mode<synchronous>, transform_indices = @transform_10, window_bounds = array<i64: 1, 32>}, {pipeline_mode = #tpu.pipeline_mode<synchronous>, transform_indices = @transform_11, window_bounds = array<i64: 1, 32>}, {pipeline_mode = #tpu.pipeline_mode<synchronous>, transform_indices = @transform_12, window_bounds = array<i64: 1, 32>}, {transform_indices = @transform_13, window_bounds = array<i64: 2, 8, 32>}]} {
    %c0 = arith.constant 0 : index
    %c0_0 = arith.constant 0 : index
    %c0_1 = arith.constant 0 : index
    %0 = vector.load %arg1[%c0, %c0_0, %c0_1] : memref<2x8x32xbf16, #tpu.memory_space<vmem>>, vector<2x8x32xbf16>
    %1 = arith.extf %0 : vector<2x8x32xbf16> to vector<2x8x32xf32>
    %2 = vector.shape_cast %1 : vector<2x8x32xf32> to vector<16x32xf32>
    %3 = arith.truncf %2 : vector<16x32xf32> to vector<16x32xbf16>
    %c0_2 = arith.constant 0 : index
    %c0_3 = arith.constant 0 : index
    %4 = vector.load %arg2[%c0_2, %c0_3] : memref<32x96xbf16, #tpu.memory_space<vmem>>, vector<32x96xbf16>
    %cst = arith.constant dense<0.000000e+00> : vector<16x96xf32>
    %5 = tpu.matmul %3, %4, %cst {dimension_numbers = #tpu.dot_dimension_numbers<[1], [0], [0], [1], [0, 0, 1, 1], [], []>} : vector<16x32xbf16>, vector<32x96xbf16>, vector<16x96xf32> -> vector<16x96xf32>
    %c0_4 = arith.constant 0 : index
    %c0_5 = arith.constant 0 : index
    %6 = vector.load %arg3[%c0_4, %c0_5] : memref<1x96xf32, #tpu.memory_space<vmem>>, vector<1x96xf32>
    %7 = vector.broadcast %6 : vector<1x96xf32> to vector<16x96xf32>
    %8 = arith.addf %5, %7 : vector<16x96xf32>
    %9 = vector.shape_cast %8 : vector<16x96xf32> to vector<2x8x96xf32>
    %10 = arith.truncf %9 : vector<2x8x96xf32> to vector<2x8x96xbf16>
    %11 = vector.extract_strided_slice %10 {offsets = [0, 0, 0], sizes = [2, 8, 8], strides = [1, 1, 1]} : vector<2x8x96xbf16> to vector<2x8x8xbf16>
    %12 = vector.extract_strided_slice %10 {offsets = [0, 0, 32], sizes = [2, 8, 8], strides = [1, 1, 1]} : vector<2x8x96xbf16> to vector<2x8x8xbf16>
    %13 = vector.extract_strided_slice %10 {offsets = [0, 0, 64], sizes = [2, 8, 8], strides = [1, 1, 1]} : vector<2x8x96xbf16> to vector<2x8x8xbf16>
    "tpu.trace_start"() <{level = 10 : i32, message = "bqd,bkd->bqk"}> : () -> ()
    %cst_6 = arith.constant dense<0.000000e+00> : vector<2x8x8xf32>
    %14 = tpu.matmul %11, %12, %cst_6 {dimension_numbers = #tpu.dot_dimension_numbers<[2], [2], [1], [1], [0, 0, 0, 1, 1, 1], [0], [0]>} : vector<2x8x8xbf16>, vector<2x8x8xbf16>, vector<2x8x8xf32> -> vector<2x8x8xf32>
    "tpu.trace_stop"() : () -> ()
    %cst_7 = arith.constant dense<0xFF800000> : vector<2x8xf32>
    %15 = vector.multi_reduction <maximumf>, %14, %cst_7 [2] : vector<2x8x8xf32> to vector<2x8xf32>
    %16 = vector.shape_cast %15 : vector<2x8xf32> to vector<2x8x1xf32>
    %17 = vector.broadcast %16 : vector<2x8x1xf32> to vector<2x8x8xf32>
    %18 = arith.subf %14, %17 : vector<2x8x8xf32>
    %19 = math.exp %18 : vector<2x8x8xf32>
    %cst_8 = arith.constant dense<0.000000e+00> : vector<2x8xf32>
    %20 = vector.multi_reduction <add>, %19, %cst_8 [2] : vector<2x8x8xf32> to vector<2x8xf32>
    %21 = vector.shape_cast %20 : vector<2x8xf32> to vector<2x8x1xf32>
    %22 = tpu.reciprocal %21 {approx = true} : vector<2x8x1xf32> -> vector<2x8x1xf32>
    %23 = vector.broadcast %22 : vector<2x8x1xf32> to vector<2x8x8xf32>
    %24 = arith.mulf %19, %23 : vector<2x8x8xf32>
    %25 = arith.truncf %24 : vector<2x8x8xf32> to vector<2x8x8xbf16>
    "tpu.trace_start"() <{level = 10 : i32, message = "bqk,bkd->bqd"}> : () -> ()
    %cst_9 = arith.constant dense<0.000000e+00> : vector<2x8x8xf32>
    %26 = tpu.matmul %25, %13, %cst_9 {dimension_numbers = #tpu.dot_dimension_numbers<[2], [1], [1], [2], [0, 0, 0, 1, 1, 2], [0], [0]>} : vector<2x8x8xbf16>, vector<2x8x8xbf16>, vector<2x8x8xf32> -> vector<2x8x8xf32>
    "tpu.trace_stop"() : () -> ()
    %27 = vector.shape_cast %26 : vector<2x8x8xf32> to vector<16x8xf32>
    %28 = arith.truncf %27 : vector<16x8xf32> to vector<16x8xbf16>
    %c0_10 = arith.constant 0 : index
    %c0_11 = arith.constant 0 : index
    %29 = vector.load %arg15[%c0_10, %c0_11] : memref<16x32xbf16, #tpu.memory_space<vmem>>, vector<16x8xbf16>
    tpu.vector_store %arg15[%c0_10, %c0_11], %28 {strides = array<i32>} : memref<16x32xbf16, #tpu.memory_space<vmem>>, vector<16x8xbf16>,
    %30 = vector.extract_strided_slice %10 {offsets = [0, 0, 8], sizes = [2, 8, 8], strides = [1, 1, 1]} : vector<2x8x96xbf16> to vector<2x8x8xbf16>
    %31 = vector.extract_strided_slice %10 {offsets = [0, 0, 40], sizes = [2, 8, 8], strides = [1, 1, 1]} : vector<2x8x96xbf16> to vector<2x8x8xbf16>
    %32 = vector.extract_strided_slice %10 {offsets = [0, 0, 72], sizes = [2, 8, 8], strides = [1, 1, 1]} : vector<2x8x96xbf16> to vector<2x8x8xbf16>
    "tpu.trace_start"() <{level = 10 : i32, message = "bqd,bkd->bqk"}> : () -> ()
    %cst_12 = arith.constant dense<0.000000e+00> : vector<2x8x8xf32>
    %33 = tpu.matmul %30, %31, %cst_12 {dimension_numbers = #tpu.dot_dimension_numbers<[2], [2], [1], [1], [0, 0, 0, 1, 1, 1], [0], [0]>} : vector<2x8x8xbf16>, vector<2x8x8xbf16>, vector<2x8x8xf32> -> vector<2x8x8xf32>
    "tpu.trace_stop"() : () -> ()
    %cst_13 = arith.constant dense<0xFF800000> : vector<2x8xf32>
    %34 = vector.multi_reduction <maximumf>, %33, %cst_13 [2] : vector<2x8x8xf32> to vector<2x8xf32>
    %35 = vector.shape_cast %34 : vector<2x8xf32> to vector<2x8x1xf32>
    %36 = vector.broadcast %35 : vector<2x8x1xf32> to vector<2x8x8xf32>
    %37 = arith.subf %33, %36 : vector<2x8x8xf32>
    %38 = math.exp %37 : vector<2x8x8xf32>
    %cst_14 = arith.constant dense<0.000000e+00> : vector<2x8xf32>
    %39 = vector.multi_reduction <add>, %38, %cst_14 [2] : vector<2x8x8xf32> to vector<2x8xf32>
    %40 = vector.shape_cast %39 : vector<2x8xf32> to vector<2x8x1xf32>
    %41 = tpu.reciprocal %40 {approx = true} : vector<2x8x1xf32> -> vector<2x8x1xf32>
    %42 = vector.broadcast %41 : vector<2x8x1xf32> to vector<2x8x8xf32>
    %43 = arith.mulf %38, %42 : vector<2x8x8xf32>
    %44 = arith.truncf %43 : vector<2x8x8xf32> to vector<2x8x8xbf16>
    "tpu.trace_start"() <{level = 10 : i32, message = "bqk,bkd->bqd"}> : () -> ()
    %cst_15 = arith.constant dense<0.000000e+00> : vector<2x8x8xf32>
    %45 = tpu.matmul %44, %32, %cst_15 {dimension_numbers = #tpu.dot_dimension_numbers<[2], [1], [1], [2], [0, 0, 0, 1, 1, 2], [0], [0]>} : vector<2x8x8xbf16>, vector<2x8x8xbf16>, vector<2x8x8xf32> -> vector<2x8x8xf32>
    "tpu.trace_stop"() : () -> ()
    %46 = vector.shape_cast %45 : vector<2x8x8xf32> to vector<16x8xf32>
    %47 = arith.truncf %46 : vector<16x8xf32> to vector<16x8xbf16>
    %c0_16 = arith.constant 0 : index
    %c8 = arith.constant 8 : index
    %48 = vector.load %arg15[%c0_16, %c8] : memref<16x32xbf16, #tpu.memory_space<vmem>>, vector<16x8xbf16>
    tpu.vector_store %arg15[%c0_16, %c8], %47 {strides = array<i32>} : memref<16x32xbf16, #tpu.memory_space<vmem>>, vector<16x8xbf16>,
    %49 = vector.extract_strided_slice %10 {offsets = [0, 0, 16], sizes = [2, 8, 8], strides = [1, 1, 1]} : vector<2x8x96xbf16> to vector<2x8x8xbf16>
    %50 = vector.extract_strided_slice %10 {offsets = [0, 0, 48], sizes = [2, 8, 8], strides = [1, 1, 1]} : vector<2x8x96xbf16> to vector<2x8x8xbf16>
    %51 = vector.extract_strided_slice %10 {offsets = [0, 0, 80], sizes = [2, 8, 8], strides = [1, 1, 1]} : vector<2x8x96xbf16> to vector<2x8x8xbf16>
    "tpu.trace_start"() <{level = 10 : i32, message = "bqd,bkd->bqk"}> : () -> ()
    %cst_17 = arith.constant dense<0.000000e+00> : vector<2x8x8xf32>
    %52 = tpu.matmul %49, %50, %cst_17 {dimension_numbers = #tpu.dot_dimension_numbers<[2], [2], [1], [1], [0, 0, 0, 1, 1, 1], [0], [0]>} : vector<2x8x8xbf16>, vector<2x8x8xbf16>, vector<2x8x8xf32> -> vector<2x8x8xf32>
    "tpu.trace_stop"() : () -> ()
    %cst_18 = arith.constant dense<0xFF800000> : vector<2x8xf32>
    %53 = vector.multi_reduction <maximumf>, %52, %cst_18 [2] : vector<2x8x8xf32> to vector<2x8xf32>
    %54 = vector.shape_cast %53 : vector<2x8xf32> to vector<2x8x1xf32>
    %55 = vector.broadcast %54 : vector<2x8x1xf32> to vector<2x8x8xf32>
    %56 = arith.subf %52, %55 : vector<2x8x8xf32>
    %57 = math.exp %56 : vector<2x8x8xf32>
    %cst_19 = arith.constant dense<0.000000e+00> : vector<2x8xf32>
    %58 = vector.multi_reduction <add>, %57, %cst_19 [2] : vector<2x8x8xf32> to vector<2x8xf32>
    %59 = vector.shape_cast %58 : vector<2x8xf32> to vector<2x8x1xf32>
    %60 = tpu.reciprocal %59 {approx = true} : vector<2x8x1xf32> -> vector<2x8x1xf32>
    %61 = vector.broadcast %60 : vector<2x8x1xf32> to vector<2x8x8xf32>
    %62 = arith.mulf %57, %61 : vector<2x8x8xf32>
    %63 = arith.truncf %62 : vector<2x8x8xf32> to vector<2x8x8xbf16>
    "tpu.trace_start"() <{level = 10 : i32, message = "bqk,bkd->bqd"}> : () -> ()
    %cst_20 = arith.constant dense<0.000000e+00> : vector<2x8x8xf32>
    %64 = tpu.matmul %63, %51, %cst_20 {dimension_numbers = #tpu.dot_dimension_numbers<[2], [1], [1], [2], [0, 0, 0, 1, 1, 2], [0], [0]>} : vector<2x8x8xbf16>, vector<2x8x8xbf16>, vector<2x8x8xf32> -> vector<2x8x8xf32>
    "tpu.trace_stop"() : () -> ()
    %65 = vector.shape_cast %64 : vector<2x8x8xf32> to vector<16x8xf32>
    %66 = arith.truncf %65 : vector<16x8xf32> to vector<16x8xbf16>
    %c0_21 = arith.constant 0 : index
    %c16 = arith.constant 16 : index
    %67 = vector.load %arg15[%c0_21, %c16] : memref<16x32xbf16, #tpu.memory_space<vmem>>, vector<16x8xbf16>
    tpu.vector_store %arg15[%c0_21, %c16], %66 {strides = array<i32>} : memref<16x32xbf16, #tpu.memory_space<vmem>>, vector<16x8xbf16>,
    %68 = vector.extract_strided_slice %10 {offsets = [0, 0, 24], sizes = [2, 8, 8], strides = [1, 1, 1]} : vector<2x8x96xbf16> to vector<2x8x8xbf16>
    %69 = vector.extract_strided_slice %10 {offsets = [0, 0, 56], sizes = [2, 8, 8], strides = [1, 1, 1]} : vector<2x8x96xbf16> to vector<2x8x8xbf16>
    %70 = vector.extract_strided_slice %10 {offsets = [0, 0, 88], sizes = [2, 8, 8], strides = [1, 1, 1]} : vector<2x8x96xbf16> to vector<2x8x8xbf16>
    "tpu.trace_start"() <{level = 10 : i32, message = "bqd,bkd->bqk"}> : () -> ()
    %cst_22 = arith.constant dense<0.000000e+00> : vector<2x8x8xf32>
    %71 = tpu.matmul %68, %69, %cst_22 {dimension_numbers = #tpu.dot_dimension_numbers<[2], [2], [1], [1], [0, 0, 0, 1, 1, 1], [0], [0]>} : vector<2x8x8xbf16>, vector<2x8x8xbf16>, vector<2x8x8xf32> -> vector<2x8x8xf32>
    "tpu.trace_stop"() : () -> ()
    %cst_23 = arith.constant dense<0xFF800000> : vector<2x8xf32>
    %72 = vector.multi_reduction <maximumf>, %71, %cst_23 [2] : vector<2x8x8xf32> to vector<2x8xf32>
    %73 = vector.shape_cast %72 : vector<2x8xf32> to vector<2x8x1xf32>
    %74 = vector.broadcast %73 : vector<2x8x1xf32> to vector<2x8x8xf32>
    %75 = arith.subf %71, %74 : vector<2x8x8xf32>
    %76 = math.exp %75 : vector<2x8x8xf32>
    %cst_24 = arith.constant dense<0.000000e+00> : vector<2x8xf32>
    %77 = vector.multi_reduction <add>, %76, %cst_24 [2] : vector<2x8x8xf32> to vector<2x8xf32>
    %78 = vector.shape_cast %77 : vector<2x8xf32> to vector<2x8x1xf32>
    %79 = tpu.reciprocal %78 {approx = true} : vector<2x8x1xf32> -> vector<2x8x1xf32>
    %80 = vector.broadcast %79 : vector<2x8x1xf32> to vector<2x8x8xf32>
    %81 = arith.mulf %76, %80 : vector<2x8x8xf32>
    %82 = arith.truncf %81 : vector<2x8x8xf32> to vector<2x8x8xbf16>
    "tpu.trace_start"() <{level = 10 : i32, message = "bqk,bkd->bqd"}> : () -> ()
    %cst_25 = arith.constant dense<0.000000e+00> : vector<2x8x8xf32>
    %83 = tpu.matmul %82, %70, %cst_25 {dimension_numbers = #tpu.dot_dimension_numbers<[2], [1], [1], [2], [0, 0, 0, 1, 1, 2], [0], [0]>} : vector<2x8x8xbf16>, vector<2x8x8xbf16>, vector<2x8x8xf32> -> vector<2x8x8xf32>
    "tpu.trace_stop"() : () -> ()
    %84 = vector.shape_cast %83 : vector<2x8x8xf32> to vector<16x8xf32>
    %85 = arith.truncf %84 : vector<16x8xf32> to vector<16x8xbf16>
    %c0_26 = arith.constant 0 : index
    %c24 = arith.constant 24 : index
    %86 = vector.load %arg15[%c0_26, %c24] : memref<16x32xbf16, #tpu.memory_space<vmem>>, vector<16x8xbf16>
    tpu.vector_store %arg15[%c0_26, %c24], %85 {strides = array<i32>} : memref<16x32xbf16, #tpu.memory_space<vmem>>, vector<16x8xbf16>,
    %c0_27 = arith.constant 0 : index
    %c0_28 = arith.constant 0 : index
    %87 = vector.load %arg15[%c0_27, %c0_28] : memref<16x32xbf16, #tpu.memory_space<vmem>>, vector<16x32xbf16>
    %c0_29 = arith.constant 0 : index
    %c0_30 = arith.constant 0 : index
    %88 = vector.load %arg4[%c0_29, %c0_30] : memref<32x32xbf16, #tpu.memory_space<vmem>>, vector<32x32xbf16>
    %cst_31 = arith.constant dense<0.000000e+00> : vector<16x32xf32>
    %89 = tpu.matmul %87, %88, %cst_31 {dimension_numbers = #tpu.dot_dimension_numbers<[1], [0], [0], [1], [0, 0, 1, 1], [], []>} : vector<16x32xbf16>, vector<32x32xbf16>, vector<16x32xf32> -> vector<16x32xf32>
    %c0_32 = arith.constant 0 : index
    %c0_33 = arith.constant 0 : index
    %90 = vector.load %arg5[%c0_32, %c0_33] : memref<1x32xf32, #tpu.memory_space<vmem>>, vector<1x32xf32>
    %91 = vector.broadcast %90 : vector<1x32xf32> to vector<16x32xf32>
    %92 = arith.addf %89, %91 : vector<16x32xf32>
    %93 = arith.addf %2, %92 : vector<16x32xf32>
    %cst_34 = arith.constant dense<0.000000e+00> : vector<16xf32>
    %94 = vector.multi_reduction <add>, %93, %cst_34 [1] : vector<16x32xf32> to vector<16xf32>
    %95 = vector.shape_cast %94 : vector<16xf32> to vector<16x1xf32>
    %cst_35 = arith.constant 3.200000e+01 : f32
    %96 = vector.broadcast %cst_35 : f32 to vector<16x1xf32>
    %97 = arith.divf %95, %96 : vector<16x1xf32>
    %98 = vector.broadcast %97 : vector<16x1xf32> to vector<16x32xf32>
    %99 = arith.subf %93, %98 : vector<16x32xf32>
    %100 = arith.mulf %99, %99 : vector<16x32xf32>
    %cst_36 = arith.constant dense<0.000000e+00> : vector<16xf32>
    %101 = vector.multi_reduction <add>, %100, %cst_36 [1] : vector<16x32xf32> to vector<16xf32>
    %102 = vector.shape_cast %101 : vector<16xf32> to vector<16x1xf32>
    %cst_37 = arith.constant 3.200000e+01 : f32
    %103 = vector.broadcast %cst_37 : f32 to vector<16x1xf32>
    %104 = arith.divf %102, %103 : vector<16x1xf32>
    %105 = vector.broadcast %97 : vector<16x1xf32> to vector<16x32xf32>
    %106 = arith.subf %93, %105 : vector<16x32xf32>
    %cst_38 = arith.constant 9.99999974E-6 : f32
    %107 = vector.broadcast %cst_38 : f32 to vector<16x1xf32>
    %108 = arith.addf %104, %107 : vector<16x1xf32>
    %109 = math.rsqrt %108 : vector<16x1xf32>
    %110 = vector.broadcast %109 : vector<16x1xf32> to vector<16x32xf32>
    %111 = arith.mulf %106, %110 : vector<16x32xf32>
    %c0_39 = arith.constant 0 : index
    %c0_40 = arith.constant 0 : index
    %112 = vector.load %arg6[%c0_39, %c0_40] : memref<1x32xf32, #tpu.memory_space<vmem>>, vector<1x32xf32>
    %113 = vector.broadcast %112 : vector<1x32xf32> to vector<16x32xf32>
    %114 = arith.mulf %111, %113 : vector<16x32xf32>
    %c0_41 = arith.constant 0 : index
    %c0_42 = arith.constant 0 : index
    %115 = vector.load %arg7[%c0_41, %c0_42] : memref<1x32xf32, #tpu.memory_space<vmem>>, vector<1x32xf32>
    %116 = vector.broadcast %115 : vector<1x32xf32> to vector<16x32xf32>
    %117 = arith.addf %114, %116 : vector<16x32xf32>
    %118 = arith.truncf %117 : vector<16x32xf32> to vector<16x32xbf16>
    %c0_43 = arith.constant 0 : index
    %c0_44 = arith.constant 0 : index
    %119 = vector.load %arg8[%c0_43, %c0_44] : memref<32x64xbf16, #tpu.memory_space<vmem>>, vector<32x64xbf16>
    %cst_45 = arith.constant dense<0.000000e+00> : vector<16x64xf32>
    %120 = tpu.matmul %118, %119, %cst_45 {dimension_numbers = #tpu.dot_dimension_numbers<[1], [0], [0], [1], [0, 0, 1, 1], [], []>} : vector<16x32xbf16>, vector<32x64xbf16>, vector<16x64xf32> -> vector<16x64xf32>
    %c0_46 = arith.constant 0 : index
    %c0_47 = arith.constant 0 : index
    %121 = vector.load %arg9[%c0_46, %c0_47] : memref<1x64xf32, #tpu.memory_space<vmem>>, vector<1x64xf32>
    %122 = vector.broadcast %121 : vector<1x64xf32> to vector<16x64xf32>
    %123 = arith.addf %120, %122 : vector<16x64xf32>
    %cst_48 = arith.constant 0.000000e+00 : f32
    %124 = vector.broadcast %cst_48 : f32 to vector<16x64xf32>
    %125 = arith.maximumf %123, %124 : vector<16x64xf32>
    %126 = arith.truncf %125 : vector<16x64xf32> to vector<16x64xbf16>
    %c0_49 = arith.constant 0 : index
    %c0_50 = arith.constant 0 : index
    %127 = vector.load %arg10[%c0_49, %c0_50] : memref<64x32xbf16, #tpu.memory_space<vmem>>, vector<64x32xbf16>
    %cst_51 = arith.constant dense<0.000000e+00> : vector<16x32xf32>
    %128 = tpu.matmul %126, %127, %cst_51 {dimension_numbers = #tpu.dot_dimension_numbers<[1], [0], [0], [1], [0, 0, 1, 1], [], []>} : vector<16x64xbf16>, vector<64x32xbf16>, vector<16x32xf32> -> vector<16x32xf32>
    %c0_52 = arith.constant 0 : index
    %c0_53 = arith.constant 0 : index
    %129 = vector.load %arg11[%c0_52, %c0_53] : memref<1x32xf32, #tpu.memory_space<vmem>>, vector<1x32xf32>
    %130 = vector.broadcast %129 : vector<1x32xf32> to vector<16x32xf32>
    %131 = arith.addf %128, %130 : vector<16x32xf32>
    %132 = arith.addf %117, %131 : vector<16x32xf32>
    %cst_54 = arith.constant dense<0.000000e+00> : vector<16xf32>
    %133 = vector.multi_reduction <add>, %132, %cst_54 [1] : vector<16x32xf32> to vector<16xf32>
    %134 = vector.shape_cast %133 : vector<16xf32> to vector<16x1xf32>
    %cst_55 = arith.constant 3.200000e+01 : f32
    %135 = vector.broadcast %cst_55 : f32 to vector<16x1xf32>
    %136 = arith.divf %134, %135 : vector<16x1xf32>
    %137 = vector.broadcast %136 : vector<16x1xf32> to vector<16x32xf32>
    %138 = arith.subf %132, %137 : vector<16x32xf32>
    %139 = arith.mulf %138, %138 : vector<16x32xf32>
    %cst_56 = arith.constant dense<0.000000e+00> : vector<16xf32>
    %140 = vector.multi_reduction <add>, %139, %cst_56 [1] : vector<16x32xf32> to vector<16xf32>
    %141 = vector.shape_cast %140 : vector<16xf32> to vector<16x1xf32>
    %cst_57 = arith.constant 3.200000e+01 : f32
    %142 = vector.broadcast %cst_57 : f32 to vector<16x1xf32>
    %143 = arith.divf %141, %142 : vector<16x1xf32>
    %144 = vector.broadcast %136 : vector<16x1xf32> to vector<16x32xf32>
    %145 = arith.subf %132, %144 : vector<16x32xf32>
    %cst_58 = arith.constant 9.99999974E-6 : f32
    %146 = vector.broadcast %cst_58 : f32 to vector<16x1xf32>
    %147 = arith.addf %143, %146 : vector<16x1xf32>
    %148 = math.rsqrt %147 : vector<16x1xf32>
    %149 = vector.broadcast %148 : vector<16x1xf32> to vector<16x32xf32>
    %150 = arith.mulf %145, %149 : vector<16x32xf32>
    %c0_59 = arith.constant 0 : index
    %c0_60 = arith.constant 0 : index
    %151 = vector.load %arg12[%c0_59, %c0_60] : memref<1x32xf32, #tpu.memory_space<vmem>>, vector<1x32xf32>
    %152 = vector.broadcast %151 : vector<1x32xf32> to vector<16x32xf32>
    %153 = arith.mulf %150, %152 : vector<16x32xf32>
    %c0_61 = arith.constant 0 : index
    %c0_62 = arith.constant 0 : index
    %154 = vector.load %arg13[%c0_61, %c0_62] : memref<1x32xf32, #tpu.memory_space<vmem>>, vector<1x32xf32>
    %155 = vector.broadcast %154 : vector<1x32xf32> to vector<16x32xf32>
    %156 = arith.addf %153, %155 : vector<16x32xf32>
    %157 = vector.shape_cast %156 : vector<16x32xf32> to vector<2x8x32xf32>
    %158 = arith.truncf %157 : vector<2x8x32xf32> to vector<2x8x32xbf16>
    %c0_63 = arith.constant 0 : index
    %c0_64 = arith.constant 0 : index
    %c0_65 = arith.constant 0 : index
    %159 = vector.load %arg14[%c0_63, %c0_64, %c0_65] : memref<2x8x32xbf16, #tpu.memory_space<vmem>>, vector<2x8x32xbf16>
    tpu.vector_store %arg14[%c0_63, %c0_64, %c0_65], %158 {strides = array<i32>} : memref<2x8x32xbf16, #tpu.memory_space<vmem>>, vector<2x8x32xbf16>,
    return
  }
  func.func @transform_0(%arg0: i32) -> (i32, i32, i32) {
    %c0_i32 = arith.constant 0 : i32
    %c0_i32_0 = arith.constant 0 : i32
    %c0_i32_1 = arith.constant 0 : i32
    return %arg0, %c0_i32, %c0_i32_0 : i32, i32, i32
  }
  func.func @transform_1(%arg0: i32) -> (i32, i32) {
    %c0_i32 = arith.constant 0 : i32
    %c0_i32_0 = arith.constant 0 : i32
    %c0_i32_1 = arith.constant 0 : i32
    return %c0_i32, %c0_i32_0 : i32, i32
  }
  func.func @transform_2(%arg0: i32) -> (i32, i32) {
    %c0_i32 = arith.constant 0 : i32
    %c0_i32_0 = arith.constant 0 : i32
    %c0_i32_1 = arith.constant 0 : i32
    return %c0_i32, %c0_i32_0 : i32, i32
  }
  func.func @transform_3(%arg0: i32) -> (i32, i32) {
    %c0_i32 = arith.constant 0 : i32
    %c0_i32_0 = arith.constant 0 : i32
    %c0_i32_1 = arith.constant 0 : i32
    return %c0_i32, %c0_i32_0 : i32, i32
  }
  func.func @transform_4(%arg0: i32) -> (i32, i32) {
    %c0_i32 = arith.constant 0 : i32
    %c0_i32_0 = arith.constant 0 : i32
    %c0_i32_1 = arith.constant 0 : i32
    return %c0_i32, %c0_i32_0 : i32, i32
  }
  func.func @transform_5(%arg0: i32) -> (i32, i32) {
    %c0_i32 = arith.constant 0 : i32
    %c0_i32_0 = arith.constant 0 : i32
    %c0_i32_1 = arith.constant 0 : i32
    return %c0_i32, %c0_i32_0 : i32, i32
  }
  func.func @transform_6(%arg0: i32) -> (i32, i32) {
    %c0_i32 = arith.constant 0 : i32
    %c0_i32_0 = arith.constant 0 : i32
    %c0_i32_1 = arith.constant 0 : i32
    return %c0_i32, %c0_i32_0 : i32, i32
  }
  func.func @transform_7(%arg0: i32) -> (i32, i32) {
    %c0_i32 = arith.constant 0 : i32
    %c0_i32_0 = arith.constant 0 : i32
    %c0_i32_1 = arith.constant 0 : i32
    return %c0_i32, %c0_i32_0 : i32, i32
  }
  func.func @transform_8(%arg0: i32) -> (i32, i32) {
    %c0_i32 = arith.constant 0 : i32
    %c0_i32_0 = arith.constant 0 : i32
    %c0_i32_1 = arith.constant 0 : i32
    return %c0_i32, %c0_i32_0 : i32, i32
  }
  func.func @transform_9(%arg0: i32) -> (i32, i32) {
    %c0_i32 = arith.constant 0 : i32
    %c0_i32_0 = arith.constant 0 : i32
    %c0_i32_1 = arith.constant 0 : i32
    return %c0_i32, %c0_i32_0 : i32, i32
  }
  func.func @transform_10(%arg0: i32) -> (i32, i32) {
    %c0_i32 = arith.constant 0 : i32
    %c0_i32_0 = arith.constant 0 : i32
    %c0_i32_1 = arith.constant 0 : i32
    return %c0_i32, %c0_i32_0 : i32, i32
  }
  func.func @transform_11(%arg0: i32) -> (i32, i32) {
    %c0_i32 = arith.constant 0 : i32
    %c0_i32_0 = arith.constant 0 : i32
    %c0_i32_1 = arith.constant 0 : i32
    return %c0_i32, %c0_i32_0 : i32, i32
  }
  func.func @transform_12(%arg0: i32) -> (i32, i32) {
    %c0_i32 = arith.constant 0 : i32
    %c0_i32_0 = arith.constant 0 : i32
    %c0_i32_1 = arith.constant 0 : i32
    return %c0_i32, %c0_i32_0 : i32, i32
  }
  func.func @transform_13(%arg0: i32) -> (i32, i32, i32) {
    %c0_i32 = arith.constant 0 : i32
    %c0_i32_0 = arith.constant 0 : i32
    %c0_i32_1 = arith.constant 0 : i32
    return %arg0, %c0_i32, %c0_i32_0 : i32, i32, i32
  }
}

</mosaic_0001>

<bundles_post_ra>
// kernel: tpu_custom_call.1
= control target key start
LH: loop header
LB: loop body
LE: loop exit
PB: predicated region body
PF: predicated region fallthrough
CT: control target
= control target key end

     0   :  { %18 = vsyncpa [#allocation4], 0  ;;  %s2269_s0 = inlined_call_operand.hbm [shape: bf16[2,8,32], index: 0, kind: input, shape index: {}]   ;;  %s2270_s1 = inlined_call_operand.vmem [shape: bf16[32,96], index: 1, kind: input, shape index: {}]   ;;  %s2271_s2 = inlined_call_operand.hbm [shape: f32[1,96], index: 2, kind: input, shape index: {}]   ;;  %s2272_s3 = inlined_call_operand.vmem [shape: bf16[32,32], index: 3, kind: input, shape index: {}]   ;;  %s2273_s4 = inlined_call_operand.hbm [shape: f32[1,32], index: 4, kind: input, shape index: {}]   ;;  %s2274_s5 = inlined_call_operand.hbm [shape: f32[1,32], index: 5, kind: input, shape index: {}]   ;;  %s2275_s6 = inlined_call_operand.hbm [shape: f32[1,32], index: 6, kind: input, shape index: {}]   ;;  %s2276_s7 = inlined_call_operand.vmem [shape: bf16[32,64], index: 7, kind: input, shape index: {}]   ;;  %s2277_s8 = inlined_call_operand.hbm [shape: f32[1,64], index: 8, kind: input, shape index: {}]   ;;  %s2278_s9 = inlined_call_operand.vmem [shape: bf16[64,32], index: 9, kind: input, shape index: {}]   ;;  %s2279_s10 = inlined_call_operand.vmem [shape: f32[1,32], index: 10, kind: input, shape index: {}]   ;;  %s2280_s11 = inlined_call_operand.vmem [shape: f32[1,32], index: 11, kind: input, shape index: {}]   ;;  %s2281_s12 = inlined_call_operand.vmem [shape: f32[1,32], index: 12, kind: input, shape index: {}]   ;;  %s2282_s13 = inlined_call_operand.hbm [shape: bf16[2,8,32], index: 13, kind: output, shape index: {}]  }
   0x1   :  { %19 = vsyncpa [#allocation7], 0 }
   0x2   :  { %20 = vsyncpa [#allocation10], 0 }
   0x3   :  { %21 = vsyncpa [#allocation13], 0 }
   0x4   :  { %22 = vsyncpa [#allocation5], 0  ;;  %s1937_s25 = smov [#allocation6]   ;;  %s1938_s27 = smov [#allocation9]  }
   0x5   :  { %s43_s26 = sshll.u32 %s1937_s25, 4  ;;  %s65_s28 = sshll.u32 %s1938_s27, 4  ;;  %s44_s26 = int_to_ptr.vmem [resolvable:$true] %s43_s26  ;;  %s66_s28 = int_to_ptr.vmem [resolvable:$true] %s65_s28 }
   0x6   :  { %s1795_s29 = scalar_lea.vmem %s44_s26, 16  ;;  %s1799_s30 = scalar_lea.vmem %s44_s26, 32 }
   0x7   :  { %p1796_p0 = scmp.ne.s32.totalorder %s44_s26, %s1795_s29  ;;  %p1800_p1 = scmp.lt.s32.totalorder %s44_s26, %s44_s26 }
   0x8   :  { %p1801_p2 = scmp.lt.s32.totalorder %s1799_s30, %s1795_s29 }
   0xa   :  { %p1802_p3 = por %p1801_p2, %p1800_p1 }
   0xc   :  { %p1803_p4 = pnand %p1802_p3, %p1796_p0 }
   0xe   :  { %1806 = shalt.err (!%p1803_p4)
}
   0xf   :  { %46 = dma.hbm_to_vmem [thread:$0]  %s2271_s2, 16, %s44_s26, [#allocation7]  }
  0x10   :  { %s1815_s16 = scalar_lea.vmem %s66_s28, 16  ;;  %s1819_s17 = scalar_lea.vmem %s66_s28, 32 }
  0x11   :  { %p1816_p5 = scmp.ne.s32.totalorder %s66_s28, %s1815_s16  ;;  %p1820_p6 = scmp.lt.s32.totalorder %s66_s28, %s66_s28 }
  0x12   :  { %p1821_p7 = scmp.lt.s32.totalorder %s1819_s17, %s1815_s16 }
  0x14   :  { %p1822_p8 = por %p1821_p7, %p1820_p6 }
  0x16   :  { %p1823_p9 = pnand %p1822_p8, %p1816_p5 }
  0x18   :  { %1826 = shalt.err (!%p1823_p9)
}
  0x19   :  { %68 = dma.hbm_to_vmem [thread:$0]  %s2274_s5, 16, %s66_s28, [#allocation10]  }
  0x1a   :  { %s1939_s20 = smov [#allocation3]  }
  0x1b   :  { %s28_s21 = sshll.u32 %s1939_s20, 4  ;;  %s29_s21 = int_to_ptr.vmem [resolvable:$true] %s28_s21 }
  0x1c   :  { %s1835_s22 = scalar_lea.vmem %s29_s21, 128  ;;  %p1840_p11 = scmp.lt.s32.totalorder %s29_s21, %s29_s21 }
  0x1d   :  { %p1836_p10 = scmp.ne.s32.totalorder %s29_s21, %s1835_s22  ;;  %p1841_p12 = scmp.lt.s32.totalorder %s1835_s22, %s1835_s22 }
  0x1f   :  { %p1842_p13 = por %p1841_p12, %p1840_p11 }
  0x21   :  { %p1843_p0 = pnand %p1842_p13, %p1836_p10 }
  0x23   :  { %1846 = shalt.err (!%p1843_p0)
}
  0x24   :  { %s1940_s2 = smov 64   ;;  %s1941_s23 = smov 4  }
  0x25   :  { %34 = dma.hbm_to_vmem [thread:$0]  %s2269_s0, 128, %s29_s21, [#allocation4], %s1940_s2, %s1940_s2, %s1941_s23  }
  0x26   :  { %s1942_s5 = smov [#allocation8]   ;;  %s1943_s27 = smov [#allocation11]  }
  0x27   :  { %s55_s26 = sshll.u32 %s1942_s5, 4  ;;  %s75_s28 = sshll.u32 %s1943_s27, 4  ;;  %s56_s26 = int_to_ptr.vmem [resolvable:$true] %s55_s26  ;;  %s76_s28 = int_to_ptr.vmem [resolvable:$true] %s75_s28 }
  0x28   :  { %s1855_s29 = scalar_lea.vmem %s56_s26, 16  ;;  %s1859_s30 = scalar_lea.vmem %s56_s26, 32 }
  0x29   :  { %p1856_p1 = scmp.ne.s32.totalorder %s56_s26, %s1855_s29  ;;  %p1860_p2 = scmp.lt.s32.totalorder %s56_s26, %s56_s26 }
  0x2a   :  { %p1861_p3 = scmp.lt.s32.totalorder %s1859_s30, %s1855_s29 }
  0x2c   :  { %p1862_p4 = por %p1861_p3, %p1860_p2 }
  0x2e   :  { %p1863_p5 = pnand %p1862_p4, %p1856_p1 }
  0x30   :  { %1866 = shalt.err (!%p1863_p5)
}
  0x31   :  { %58 = dma.hbm_to_vmem [thread:$0]  %s2273_s4, 16, %s56_s26, [#allocation7]  }
  0x32   :  { %s1875_s16 = scalar_lea.vmem %s76_s28, 16  ;;  %s1879_s0 = scalar_lea.vmem %s76_s28, 32 }
  0x33   :  { %p1876_p6 = scmp.ne.s32.totalorder %s76_s28, %s1875_s16  ;;  %p1880_p7 = scmp.lt.s32.totalorder %s76_s28, %s76_s28 }
  0x34   :  { %p1881_p8 = scmp.lt.s32.totalorder %s1879_s0, %s1875_s16 }
  0x36   :  { %p1882_p9 = por %p1881_p8, %p1880_p7 }
  0x38   :  { %p1883_p10 = pnand %p1882_p9, %p1876_p6 }
  0x3a   :  { %1886 = shalt.err (!%p1883_p10)
}
  0x3b   :  { %78 = dma.hbm_to_vmem [thread:$0]  %s2275_s6, 16, %s76_s28, [#allocation10]  }
  0x3c   :  { %s1944_s19 = smov [#allocation12]  }
  0x3d   :  { %s87_s20 = sshll.u32 %s1944_s19, 4  ;;  %s88_s20 = int_to_ptr.vmem [resolvable:$true] %s87_s20 }
  0x3e   :  { %s1895_s21 = scalar_lea.vmem %s88_s20, 16  ;;  %s1899_s22 = scalar_lea.vmem %s88_s20, 32 }
  0x3f   :  { %p1896_p11 = scmp.ne.s32.totalorder %s88_s20, %s1895_s21  ;;  %p1900_p12 = scmp.lt.s32.totalorder %s88_s20, %s88_s20 }
  0x40   :  { %p1901_p13 = scmp.lt.s32.totalorder %s1899_s22, %s1895_s21 }
  0x42   :  { %p1902_p0 = por %p1901_p13, %p1900_p12 }
  0x44   :  { %p1903_p1 = pnand %p1902_p0, %p1896_p11 }
  0x46   :  { %1906 = shalt.err (!%p1903_p1)
}
  0x47   :  { %90 = dma.hbm_to_vmem [thread:$0]  %s2277_s8, 16, %s88_s20, [#allocation13]  }
  0x48   :  { %1927 = dma.done.wait [#allocation4], 128  }
  0x49   :  { %1928 = vsyncadd [#allocation4], 4294967168 }
  0x4a   :  { %1929 = dma.done.wait [#allocation7], 32  }
  0x4b   :  { %1930 = vsyncadd [#allocation7], 4294967264 }
  0x4c   :  { %1931 = dma.done.wait [#allocation10], 32  }
  0x4d   :  { %1932 = vsyncadd [#allocation10], 4294967264 }
  0x4e   :  { %1933 = dma.done.wait [#allocation13], 16  }
  0x4f   :  { %1934 = vsyncadd [#allocation13], 4294967280  ;;  %v1945_v0 = vmov 0.0   ;;  %vm1946_vm0 = vmmov 0   ;;  %v1734_v1 = vld [vmem:[%s2270_s1 + $0x8] sm:$0xff]   ;;  %v1735_v2 = vld [vmem:[%s2270_s1] sm:$0xff]  }
  0x50   :  { %1578 = vmatprep.subr.bf16.mxu0 %v1945_v0  ;;  %1582 = vmatprep.mubr.msk.bf16.mxu0 %vm1946_vm0, %v1945_v0  ;;  %v2064_v3 = vld [vmem:[#allocation3] sm:$0xff]   ;;  %vm146_vm1 = vcmask 261120   ;;  %v1477_v4 = vld [vmem:[#allocation6] ss:$0 sm:$0xff]  ;;  %s1947_s1 = smov 96   ;;  %vm196_vm2 = vcmask 64512  }
  0x51   :  { %1586 = vmatprep.subr.bf16.mxu1 %v1945_v0  ;;  %1588 = vmatprep.mubr.msk.bf16.mxu1 %vm1946_vm0, %v1945_v0  ;;  %s1948_s26 = smov 88   ;;  %vm321_vm3 = vcmask 1043456   ;;  %s1949_s27 = smov 120   ;;  %vm421_vm4 = vcmask 60416   ;;  %vm656_vm5 = vcmask 126016   ;;  %vm891_vm6 = vcmask 191616  }
  0x52   :  { %1579 = vmatpush3.bf16.msra.mxu0 %v1734_v1  ;;  %s1950_s28 = smov 56   ;;  %s1951_s29 = smov 80   ;;  %vm1126_vm7 = vcmask 257216   ;;  %vm1360_vm8 = vcmask 523264   ;;  %vm1453_vm9 = vcmask 257024  }
  0x53   :  { %1580 = vmatprep.subr.bf16.mxu0 %v1945_v0  ;;  %s1952_s30 = smov 112   ;;  %s1953_s14 = smov 48  }
  0x54   :  { %s1954_s15 = smov 72   ;;  %s1955_s16 = smov 104  }
  0x55   :  { %s1956_s0 = smov 40   ;;  %s1957_s17 = smov 8  }
  0x56   :  { %1581 = vmatpush3.bf16.msra.mxu0 %v1735_v2  ;;  %s1958_s18 = smov 16   ;;  %s1959_s4 = smov 24  }
  0x57   :  { %1592 = vmatprep.subr.bf16.mxu0 %v1945_v0 }
  0x59   :  { %1583 = vmatmul.mubr.msk.bf16.vlgmr.msra.gmra.mxu0 %vm146_vm1, %v2064_v3 }
  0x5a   :  { %1594 = vmatprep.mubr.msk.bf16.mxu0 %vm1946_vm0, %v1945_v0 }
 0x119   :  { %v184_v5 = vpop.f32.mrf.mxu0 }
 0x11a   :  { %v185_v6 = vadd.f32 %v1477_v4, %v184_v5 }
 0x11b   :  { %v1584_v7 = vpop.f32.mrf.mxu0 }
 0x11c   :  { %v2072_v8 = vpack.c.bf16 %v185_v6, %v185_v6 }
 0x11d   :  { %v187_v9 = vpop.f32.mrf.mxu0 }
 0x11e   :  { %v188_v10 = vadd.f32 %v1477_v4, %v187_v9  ;;  %194 = vrot.lane.b32.xlu0 %v2072_v8, %s1947_s1 }
 0x11f   :  { %v1585_v11 = vpop.f32.mrf.mxu0 }
 0x120   :  { %v2075_v12 = vpack.c.bf16 %v188_v10, %v188_v10 }
 0x122   :  { %244 = vrot.lane.b32.xlu0 %v2075_v12, %s1947_s1 }
 0x190   :  { %v195_v13 = vpop.permute.xlu0 %194 }
 0x191   :  { %v201_v14 = vsel %vm196_vm2, %v195_v13, 0 }
 0x192   :  { %1587 = vmatpush3.bf16.xpose.msra.mxu1 %v201_v14 }
 0x193   :  { %1598 = vmatprep.subr.bf16.mxu1 %v1945_v0 }
 0x194   :  { %v245_v15 = vpop.permute.xlu0 %244 }
 0x195   :  { %v250_v16 = vsel %vm196_vm2, %v245_v15, 0 }
 0x196   :  { %1593 = vmatpush3.bf16.xpose.msra.mxu0 %v250_v16 }
 0x197   :  { %1604 = vmatprep.subr.bf16.mxu0 %v1945_v0 }
 0x199   :  { %1589 = vmatmul.mubr.msk.bf16.vlgmr.msra.gmra.mxu1 %vm196_vm2, %v2072_v8 }
 0x19a   :  { %1600 = vmatprep.mubr.msk.bf16.mxu1 %vm1946_vm0, %v1945_v0 }
 0x19d   :  { %1595 = vmatmul.mubr.msk.bf16.vlgmr.msra.gmra.mxu0 %vm196_vm2, %v2075_v12 }
 0x19e   :  { %1606 = vmatprep.mubr.msk.bf16.mxu0 %vm1946_vm0, %v1945_v0 }
 0x259   :  { %v237_v17 = vpop.f32.mrf.mxu1 }
 0x25a   :  { %v292_v18 = vsel %vm196_vm2, %v237_v17, -inf }
 0x25b   :  { %293 = vmax.xlane.f32.xlu1 %v292_v18  ;;  %v1590_v19 = vpop.f32.mrf.mxu1 }
 0x25d   :  { %v240_v20 = vpop.f32.mrf.mxu1  ;;  %v286_v21 = vpop.f32.mrf.mxu0 }
 0x25e   :  { %v295_v22 = vsel %vm196_vm2, %v286_v21, -inf }
 0x25f   :  { %v1591_v23 = vpop.f32.mrf.mxu1  ;;  %296 = vmax.xlane.f32.xlu1 %v295_v22  ;;  %v1596_v24 = vpop.f32.mrf.mxu0 }
 0x261   :  { %v289_v25 = vpop.f32.mrf.mxu0 }
 0x263   :  { %v1597_v26 = vpop.f32.mrf.mxu0 }
 0x270   :  { %316 = vrot.lane.b32.xlu1 %v2072_v8, %s1940_s2 }
 0x274   :  { %365 = vrot.lane.b32.xlu1 %v2075_v12, %s1940_s2 }
 0x278   :  { %426 = vrot.lane.b32.xlu1 %v2072_v8, %s1948_s26 }
 0x2e4   :  { %v294_v27 = vpop.xlane.xlu1 %293 }
 0x2e5   :  { %v298_v28 = vsub.f32 %v237_v17, %v294_v27 }
 0x2e7   :  { %v300_v29 = vmul.f32 1.442695, %v298_v28 }
 0x2e8   :  { %v297_v30 = vpop.xlane.xlu1 %296 }
 0x2e9   :  { %1747 = vpow2.f32 %v300_v29  ;;  %v299_v31 = vsub.f32 %v286_v21, %v297_v30 }
 0x2eb   :  { %v302_v32 = vmul.f32 1.442695, %v299_v31 }
 0x2ec   :  { %v317_v33 = vpop.permute.xlu1 %316 }
 0x2ed   :  { %1749 = vpow2.f32 %v302_v32  ;;  %v323_v34 = vsel %vm321_vm3, %v317_v33, 0 }
 0x2ee   :  { %1599 = vmatpush3.bf16.msra.mxu1 %v323_v34 }
 0x2ef   :  { %1610 = vmatprep.subr.bf16.mxu1 %v1945_v0 }
 0x2f0   :  { %v366_v35 = vpop.permute.xlu1 %365 }
 0x2f1   :  { %v371_v36 = vsel %vm321_vm3, %v366_v35, 0 }
 0x2f2   :  { %1605 = vmatpush3.bf16.msra.mxu0 %v371_v36 }
 0x2f3   :  { %1616 = vmatprep.subr.bf16.mxu0 %v1945_v0 }
 0x2f4   :  { %v427_v41 = vpop.permute.xlu1 %426 }
 0x2f5   :  { %v432_v48 = vsel %vm196_vm2, %v427_v41, 0 }
 0x2f6   :  { %v1748_v37 = vpop.eup %1747 }
 0x2f7   :  { %v304_v38 = vsel %vm196_vm2, %v1748_v37, 0.0 }
 0x2f8   :  { %305 = vadd.xlane.f32.xlu0 %v304_v38 }
 0x2fa   :  { %v1750_v39 = vpop.eup %1749 }
 0x2fb   :  { %v307_v40 = vsel %vm196_vm2, %v1750_v39, 0.0 }
 0x2fc   :  { %308 = vadd.xlane.f32.xlu1 %v307_v40 }
 0x30d   :  { %476 = vrot.lane.b32.xlu1 %v2075_v12, %s1948_s26 }
 0x30e   :  { %424 = vrot.lane.b32.xlu0 %v2072_v8, %s1949_s27 }
 0x311   :  { %474 = vrot.lane.b32.xlu1 %v2075_v12, %s1949_s27 }
 0x381   :  { %v306_v42 = vpop.xlane.xlu0 %305 }
 0x382   :  { %1751 = vrcp.f32 %v306_v42 }
 0x385   :  { %v309_v43 = vpop.xlane.xlu1 %308  ;;  %v425_v53 = vpop.permute.xlu0 %424 }
 0x386   :  { %1753 = vrcp.f32 %v309_v43 }
 0x389   :  { %v477_v50 = vpop.permute.xlu1 %476 }
 0x38a   :  { %v482_v52 = vsel %vm196_vm2, %v477_v50, 0 }
 0x38d   :  { %v475_v54 = vpop.permute.xlu1 %474 }
 0x38f   :  { %v1752_v44 = vpop.eup %1751 }
 0x390   :  { %v312_v45 = vmul.f32 %v1752_v44, %v1748_v37 }
 0x392   :  { %v314_v46 = vpack.c.bf16 %v312_v45, %v312_v45 }
 0x393   :  { %v1754_v47 = vpop.eup %1753 }
 0x394   :  { %1601 = vmatmul.mubr.msk.bf16.vlgmr.msra.gmra.mxu1 %vm196_vm2, %v314_v46  ;;  %v313_v49 = vmul.f32 %v1754_v47, %v1750_v39 }
 0x395   :  { %1611 = vmatpush3.bf16.xpose.msra.mxu1 %v432_v48  ;;  %1612 = vmatprep.mubr.msk.bf16.mxu1 %vm1946_vm0, %v1945_v0 }
 0x396   :  { %v315_v51 = vpack.c.bf16 %v313_v49, %v313_v49  ;;  %1622 = vmatprep.subr.bf16.mxu1 %v1945_v0 }
 0x398   :  { %1607 = vmatmul.mubr.msk.bf16.vlgmr.msra.gmra.mxu0 %vm196_vm2, %v315_v51 }
 0x399   :  { %1617 = vmatpush3.bf16.xpose.msra.mxu0 %v482_v52  ;;  %1618 = vmatprep.mubr.msk.bf16.mxu0 %vm1946_vm0, %v1945_v0 }
 0x39a   :  { %1628 = vmatprep.subr.bf16.mxu0 %v1945_v0 }
 0x39c   :  { %1613 = vmatmul.mubr.msk.bf16.vlgmr.msra.gmra.mxu1 %vm196_vm2, %v425_v53 }
 0x39d   :  { %1624 = vmatprep.mubr.msk.bf16.mxu1 %vm1946_vm0, %v1945_v0 }
 0x3a0   :  { %1619 = vmatmul.mubr.msk.bf16.vlgmr.msra.gmra.mxu0 %vm196_vm2, %v475_v54 }
 0x3a1   :  { %1630 = vmatprep.mubr.msk.bf16.mxu0 %vm1946_vm0, %v1945_v0 }
 0x454   :  { %v359_v55 = vpop.f32.mrf.mxu1 }
 0x455   :  { %v1524_v56 = vpack.c.bf16 %v359_v55, %v359_v55 }
 0x456   :  { %v1602_v57 = vpop.f32.mrf.mxu1 }
 0x457   :  { %422 = vst.msk [vmem:[#allocation2] sm:$0xf] %vm421_vm4, %v1524_v56 }
 0x458   :  { %v362_v58 = vpop.f32.mrf.mxu1  ;;  %v407_v59 = vpop.f32.mrf.mxu0 }
 0x459   :  { %v1525_v60 = vpack.c.bf16 %v407_v59, %v407_v59 }
 0x45a   :  { %v1603_v61 = vpop.f32.mrf.mxu1  ;;  %v1608_v62 = vpop.f32.mrf.mxu0 }
 0x45b   :  { %423 = vst.msk [vmem:[#allocation2 + $0x4] sm:$0xf] %vm421_vm4, %v1525_v60 }
 0x45c   :  { %v410_v63 = vpop.f32.mrf.mxu0  ;;  %v468_v1 = vpop.f32.mrf.mxu1 }
 0x45d   :  { %v524_v2 = vsel %vm196_vm2, %v468_v1, -inf }
 0x45e   :  { %525 = vmax.xlane.f32.xlu1 %v524_v2  ;;  %v1609_v4 = vpop.f32.mrf.mxu0  ;;  %v1614_v5 = vpop.f32.mrf.mxu1 }
 0x460   :  { %v471_v6 = vpop.f32.mrf.mxu1  ;;  %v518_v7 = vpop.f32.mrf.mxu0 }
 0x461   :  { %v527_v9 = vsel %vm196_vm2, %v518_v7, -inf }
 0x462   :  { %v1615_v10 = vpop.f32.mrf.mxu1  ;;  %528 = vmax.xlane.f32.xlu0 %v527_v9  ;;  %v1620_v11 = vpop.f32.mrf.mxu0 }
 0x464   :  { %v521_v13 = vpop.f32.mrf.mxu0 }
 0x466   :  { %v1621_v14 = vpop.f32.mrf.mxu0 }
 0x46f   :  { %548 = vrot.lane.b32.xlu1 %v2072_v8, %s1950_s28 }
 0x473   :  { %661 = vrot.lane.b32.xlu1 %v2072_v8, %s1951_s29 }
 0x478   :  { %596 = vrot.lane.b32.xlu0 %v2075_v12, %s1950_s28 }
 0x47c   :  { %659 = vrot.lane.b32.xlu0 %v2072_v8, %s1952_s30 }
 0x4e7   :  { %v526_v15 = vpop.xlane.xlu1 %525 }
 0x4e8   :  { %v530_v16 = vsub.f32 %v468_v1, %v526_v15 }
 0x4ea   :  { %v532_v17 = vmul.f32 1.442695, %v530_v16 }
 0x4eb   :  { %v549_v18 = vpop.permute.xlu1 %548  ;;  %v529_v19 = vpop.xlane.xlu0 %528 }
 0x4ec   :  { %1755 = vpow2.f32 %v532_v17  ;;  %v554_v20 = vsel %vm321_vm3, %v549_v18, 0  ;;  %v531_v21 = vsub.f32 %v518_v7, %v529_v19 }
 0x4ed   :  { %1623 = vmatpush3.bf16.msra.mxu1 %v554_v20 }
 0x4ee   :  { %v534_v22 = vmul.f32 1.442695, %v531_v21  ;;  %1634 = vmatprep.subr.bf16.mxu1 %v1945_v0 }
 0x4ef   :  { %v597_v23 = vpop.permute.xlu0 %596  ;;  %v662_v29 = vpop.permute.xlu1 %661 }
 0x4f0   :  { %1757 = vpow2.f32 %v534_v22  ;;  %v602_v24 = vsel %vm321_vm3, %v597_v23, 0  ;;  %v667_v36 = vsel %vm196_vm2, %v662_v29, 0 }
 0x4f1   :  { %1629 = vmatpush3.bf16.msra.mxu0 %v602_v24 }
 0x4f2   :  { %1640 = vmatprep.subr.bf16.mxu0 %v1945_v0 }
 0x4f3   :  { %v660_v41 = vpop.permute.xlu0 %659 }
 0x4f9   :  { %v1756_v25 = vpop.eup %1755 }
 0x4fa   :  { %v536_v26 = vsel %vm196_vm2, %v1756_v25, 0.0 }
 0x4fb   :  { %537 = vadd.xlane.f32.xlu1 %v536_v26 }
 0x4fd   :  { %v1758_v27 = vpop.eup %1757 }
 0x4fe   :  { %v539_v28 = vsel %vm196_vm2, %v1758_v27, 0.0 }
 0x4ff   :  { %540 = vadd.xlane.f32.xlu1 %v539_v28 }
 0x510   :  { %711 = vrot.lane.b32.xlu1 %v2075_v12, %s1951_s29 }
 0x514   :  { %709 = vrot.lane.b32.xlu1 %v2075_v12, %s1952_s30 }
 0x584   :  { %v538_v30 = vpop.xlane.xlu1 %537 }
 0x585   :  { %1759 = vrcp.f32 %v538_v30 }
 0x588   :  { %v541_v31 = vpop.xlane.xlu1 %540 }
 0x589   :  { %1761 = vrcp.f32 %v541_v31 }
 0x58c   :  { %v712_v38 = vpop.permute.xlu1 %711 }
 0x58d   :  { %v717_v40 = vsel %vm196_vm2, %v712_v38, 0 }
 0x590   :  { %v710_v42 = vpop.permute.xlu1 %709 }
 0x592   :  { %v1760_v32 = vpop.eup %1759 }
 0x593   :  { %v544_v33 = vmul.f32 %v1760_v32, %v1756_v25 }
 0x595   :  { %v546_v34 = vpack.c.bf16 %v544_v33, %v544_v33 }
 0x596   :  { %v1762_v35 = vpop.eup %1761 }
 0x597   :  { %1625 = vmatmul.mubr.msk.bf16.vlgmr.msra.gmra.mxu1 %vm196_vm2, %v546_v34  ;;  %v545_v37 = vmul.f32 %v1762_v35, %v1758_v27 }
 0x598   :  { %1635 = vmatpush3.bf16.xpose.msra.mxu1 %v667_v36  ;;  %1636 = vmatprep.mubr.msk.bf16.mxu1 %vm1946_vm0, %v1945_v0 }
 0x599   :  { %v547_v39 = vpack.c.bf16 %v545_v37, %v545_v37  ;;  %1646 = vmatprep.subr.bf16.mxu1 %v1945_v0 }
 0x59b   :  { %1631 = vmatmul.mubr.msk.bf16.vlgmr.msra.gmra.mxu0 %vm196_vm2, %v547_v39 }
 0x59c   :  { %1641 = vmatpush3.bf16.xpose.msra.mxu0 %v717_v40  ;;  %1642 = vmatprep.mubr.msk.bf16.mxu0 %vm1946_vm0, %v1945_v0 }
 0x59d   :  { %1652 = vmatprep.subr.bf16.mxu0 %v1945_v0 }
 0x59f   :  { %1637 = vmatmul.mubr.msk.bf16.vlgmr.msra.gmra.mxu1 %vm196_vm2, %v660_v41 }
 0x5a0   :  { %1648 = vmatprep.mubr.msk.bf16.mxu1 %vm1946_vm0, %v1945_v0 }
 0x5a3   :  { %1643 = vmatmul.mubr.msk.bf16.vlgmr.msra.gmra.mxu0 %vm196_vm2, %v710_v42 }
 0x5a4   :  { %1654 = vmatprep.mubr.msk.bf16.mxu0 %vm1946_vm0, %v1945_v0 }
 0x657   :  { %v2152_v43 = vpop.f32.mrf.mxu1 }
 0x659   :  { %v1626_v44 = vpop.f32.mrf.mxu1 }
 0x65b   :  { %v593_v45 = vpop.f32.mrf.mxu1  ;;  %v2154_v46 = vpop.f32.mrf.mxu0 }
 0x65d   :  { %v1627_v47 = vpop.f32.mrf.mxu1  ;;  %v1632_v48 = vpop.f32.mrf.mxu0 }
 0x65f   :  { %v641_v49 = vpop.f32.mrf.mxu0  ;;  %v703_v50 = vpop.f32.mrf.mxu1 }
 0x660   :  { %v759_v51 = vsel %vm196_vm2, %v703_v50, -inf  ;;  %v1526_v49 = vpack.c.bf16 %v2152_v43, %v2152_v43 }
 0x661   :  { %760 = vmax.xlane.f32.xlu0 %v759_v51  ;;  %v1633_v52 = vpop.f32.mrf.mxu0  ;;  %v1638_v53 = vpop.f32.mrf.mxu1 }
 0x663   :  { %v706_v54 = vpop.f32.mrf.mxu1  ;;  %v753_v55 = vpop.f32.mrf.mxu0 }
 0x664   :  { %v762_v56 = vsel %vm196_vm2, %v753_v55, -inf }
 0x665   :  { %v1639_v57 = vpop.f32.mrf.mxu1  ;;  %763 = vmax.xlane.f32.xlu1 %v762_v56  ;;  %v1644_v58 = vpop.f32.mrf.mxu0 }
 0x667   :  { %v756_v59 = vpop.f32.mrf.mxu0 }
 0x669   :  { %v1645_v60 = vpop.f32.mrf.mxu0 }
 0x676   :  { %783 = vrot.lane.b32.xlu1 %v2072_v8, %s1953_s14 }
 0x67a   :  { %896 = vrot.lane.b32.xlu1 %v2072_v8, %s1954_s15 }
 0x67e   :  { %946 = vrot.lane.b32.xlu1 %v2075_v12, %s1954_s15 }
 0x682   :  { %944 = vrot.lane.b32.xlu1 %v2075_v12, %s1955_s16 }
 0x6ea   :  { %v761_v61 = vpop.xlane.xlu0 %760 }
 0x6eb   :  { %v765_v62 = vsub.f32 %v703_v50, %v761_v61  ;;  %v1527_v50 = vpack.c.bf16 %v2154_v46, %v2154_v46 }
 0x6ed   :  { %v767_v63 = vmul.f32 1.442695, %v765_v62 }
 0x6ee   :  { %v764_v1 = vpop.xlane.xlu1 %763 }
 0x6ef   :  { %1763 = vpow2.f32 %v767_v63  ;;  %v766_v2 = vsub.f32 %v753_v55, %v764_v1 }
 0x6f1   :  { %v769_v4 = vmul.f32 1.442695, %v766_v2 }
 0x6f2   :  { %v784_v5 = vpop.permute.xlu1 %783 }
 0x6f3   :  { %1765 = vpow2.f32 %v769_v4  ;;  %v789_v6 = vsel %vm321_vm3, %v784_v5, 0 }
 0x6f4   :  { %1647 = vmatpush3.bf16.msra.mxu1 %v789_v6 }
 0x6f5   :  { %1658 = vmatprep.subr.bf16.mxu1 %v1945_v0 }
 0x6f6   :  { %v897_v18 = vpop.permute.xlu1 %896 }
 0x6f7   :  { %v902_v22 = vsel %vm196_vm2, %v897_v18, 0 }
 0x6fa   :  { %v947_v24 = vpop.permute.xlu1 %946 }
 0x6fb   :  { %v952_v26 = vsel %vm196_vm2, %v947_v24, 0 }
 0x6fc   :  { %v1764_v7 = vpop.eup %1763 }
 0x6fd   :  { %v771_v9 = vsel %vm196_vm2, %v1764_v7, 0.0 }
 0x6fe   :  { %772 = vadd.xlane.f32.xlu0 %v771_v9  ;;  %v945_v28 = vpop.permute.xlu1 %944 }
 0x700   :  { %v1766_v10 = vpop.eup %1765 }
 0x701   :  { %v774_v11 = vsel %vm196_vm2, %v1766_v10, 0.0 }
 0x702   :  { %775 = vadd.xlane.f32.xlu0 %v774_v11 }
 0x718   :  { %831 = vrot.lane.b32.xlu0 %v2075_v12, %s1953_s14 }
 0x71c   :  { %894 = vrot.lane.b32.xlu0 %v2072_v8, %s1955_s16 }
 0x787   :  { %v773_v13 = vpop.xlane.xlu0 %772 }
 0x788   :  { %1767 = vrcp.f32 %v773_v13 }
 0x78b   :  { %v776_v14 = vpop.xlane.xlu0 %775 }
 0x78c   :  { %1769 = vrcp.f32 %v776_v14 }
 0x78f   :  { %v832_v15 = vpop.permute.xlu0 %831 }
 0x790   :  { %v837_v16 = vsel %vm321_vm3, %v832_v15, 0  ;;  %v1737_v15 = vld [vmem:[%s2272_s3 + $0x8] sm:$0xff]  }
 0x791   :  { %1653 = vmatpush3.bf16.msra.mxu0 %v837_v16  ;;  %v1738_v16 = vld [vmem:[%s2272_s3] sm:$0xff]  }
 0x792   :  { %1664 = vmatprep.subr.bf16.mxu0 %v1945_v0 }
 0x793   :  { %v895_v27 = vpop.permute.xlu0 %894 }
 0x795   :  { %v1768_v17 = vpop.eup %1767 }
 0x796   :  { %v779_v19 = vmul.f32 %v1768_v17, %v1764_v7 }
 0x798   :  { %v781_v20 = vpack.c.bf16 %v779_v19, %v779_v19 }
 0x799   :  { %v1770_v21 = vpop.eup %1769 }
 0x79a   :  { %1649 = vmatmul.mubr.msk.bf16.vlgmr.msra.gmra.mxu1 %vm196_vm2, %v781_v20  ;;  %v780_v23 = vmul.f32 %v1770_v21, %v1766_v10 }
 0x79b   :  { %1659 = vmatpush3.bf16.xpose.msra.mxu1 %v902_v22  ;;  %1660 = vmatprep.mubr.msk.bf16.mxu1 %vm1946_vm0, %v1945_v0 }
 0x79c   :  { %v782_v25 = vpack.c.bf16 %v780_v23, %v780_v23  ;;  %1670 = vmatprep.subr.bf16.mxu1 %v1945_v0 }
 0x79e   :  { %1655 = vmatmul.mubr.msk.bf16.vlgmr.msra.gmra.mxu0 %vm196_vm2, %v782_v25 }
 0x79f   :  { %1665 = vmatpush3.bf16.xpose.msra.mxu0 %v952_v26  ;;  %1666 = vmatprep.mubr.msk.bf16.mxu0 %vm1946_vm0, %v1945_v0 }
 0x7a0   :  { %1676 = vmatprep.subr.bf16.mxu0 %v1945_v0 }
 0x7a2   :  { %1661 = vmatmul.mubr.msk.bf16.vlgmr.msra.gmra.mxu1 %vm196_vm2, %v895_v27 }
 0x7a3   :  { %1672 = vmatprep.mubr.msk.bf16.mxu1 %vm1946_vm0, %v1945_v0 }
 0x7a6   :  { %1667 = vmatmul.mubr.msk.bf16.vlgmr.msra.gmra.mxu0 %vm196_vm2, %v945_v28 }
 0x7a7   :  { %1678 = vmatprep.mubr.msk.bf16.mxu0 %vm1946_vm0, %v1945_v0 }
 0x85a   :  { %v825_v29 = vpop.f32.mrf.mxu1 }
 0x85b   :  { %v1528_v1 = vpack.c.bf16 %v825_v29, %v825_v29 }
 0x85c   :  { %v1650_v30 = vpop.f32.mrf.mxu1 }
 0x85d   :  { %v1505_v30 = vld [vmem:[#allocation8] ss:$0 sm:$0xff] }
 0x85e   :  { %v828_v31 = vpop.f32.mrf.mxu1  ;;  %v873_v32 = vpop.f32.mrf.mxu0 }
 0x85f   :  { %v1529_v51 = vpack.c.bf16 %v873_v32, %v873_v32  ;;  %v120_v31 = vunpack.c.l.bf16 %v2064_v3 }
 0x860   :  { %v1651_v33 = vpop.f32.mrf.mxu1  ;;  %v1656_v34 = vpop.f32.mrf.mxu0 }
 0x862   :  { %v876_v35 = vpop.f32.mrf.mxu0  ;;  %v938_v36 = vpop.f32.mrf.mxu1 }
 0x863   :  { %v994_v37 = vsel %vm196_vm2, %v938_v36, -inf }
 0x864   :  { %995 = vmax.xlane.f32.xlu0 %v994_v37  ;;  %v1657_v38 = vpop.f32.mrf.mxu0  ;;  %v1662_v39 = vpop.f32.mrf.mxu1 }
 0x866   :  { %v941_v40 = vpop.f32.mrf.mxu1  ;;  %v988_v41 = vpop.f32.mrf.mxu0 }
 0x867   :  { %v997_v42 = vsel %vm196_vm2, %v988_v41, -inf }
 0x868   :  { %v1663_v44 = vpop.f32.mrf.mxu1  ;;  %998 = vmax.xlane.f32.xlu1 %v997_v42  ;;  %v1668_v45 = vpop.f32.mrf.mxu0 }
 0x86a   :  { %v991_v47 = vpop.f32.mrf.mxu0 }
 0x86c   :  { %v1669_v48 = vpop.f32.mrf.mxu0 }
 0x879   :  { %1018 = vrot.lane.b32.xlu1 %v2072_v8, %s1956_s0 }
 0x87d   :  { %650 = vrot.lane.b32.xlu1 %v1526_v49, %s1957_s17 }
 0x881   :  { %652 = vrot.lane.b32.xlu1 %v1527_v50, %s1957_s17 }
 0x885   :  { %887 = vrot.lane.b32.xlu1 %v1529_v51, %s1958_s18 }
 0x8ed   :  { %v996_v52 = vpop.xlane.xlu0 %995 }
 0x8ee   :  { %v1000_v53 = vsub.f32 %v938_v36, %v996_v52  ;;  %v121_v36 = vunpack.c.h.bf16 %v2064_v3 }
 0x8f0   :  { %v1002_v54 = vmul.f32 1.442695, %v1000_v53 }
 0x8f1   :  { %v999_v55 = vpop.xlane.xlu1 %998 }
 0x8f2   :  { %1771 = vpow2.f32 %v1002_v54  ;;  %v1001_v56 = vsub.f32 %v988_v41, %v999_v55  ;;  %v1740_v54 = vld [vmem:[%s2276_s7 + $0x8] sm:$0xff]   ;;  %v1741_v55 = vld [vmem:[%s2276_s7] sm:$0xff]  }
 0x8f4   :  { %v1004_v57 = vmul.f32 1.442695, %v1001_v56  ;;  %v1742_v56 = vld [vmem:[%s2278_s9 + $0x18] sm:$0xff]  }
 0x8f5   :  { %v1019_v8 = vpop.permute.xlu1 %1018 }
 0x8f6   :  { %1773 = vpow2.f32 %v1004_v57  ;;  %v1024_v43 = vsel %vm321_vm3, %v1019_v8, 0 }
 0x8f7   :  { %1671 = vmatpush3.bf16.msra.mxu1 %v1024_v43 }
 0x8f8   :  { %1682 = vmatprep.subr.bf16.mxu1 %v1945_v0 }
 0x8f9   :  { %v651_v46 = vpop.permute.xlu1 %650 }
 0x8fa   :  { %657 = vst.msk [vmem:[#allocation2] sm:$0xf] %vm656_vm5, %v651_v46 }
 0x8fd   :  { %v653_v58 = vpop.permute.xlu1 %652 }
 0x8fe   :  { %658 = vst.msk [vmem:[#allocation2 + $0x4] sm:$0xf] %vm656_vm5, %v653_v58 }
 0x8ff   :  { %v1772_v59 = vpop.eup %1771 }
 0x900   :  { %v1006_v60 = vsel %vm196_vm2, %v1772_v59, 0.0 }
 0x901   :  { %1007 = vadd.xlane.f32.xlu0 %v1006_v60  ;;  %v888_v61 = vpop.permute.xlu1 %887 }
 0x902   :  { %893 = vst.msk [vmem:[#allocation2 + $0x4] sm:$0xf] %vm891_vm6, %v888_v61 }
 0x903   :  { %v1774_v62 = vpop.eup %1773 }
 0x904   :  { %v1009_v63 = vsel %vm196_vm2, %v1774_v62, 0.0 }
 0x905   :  { %1010 = vadd.xlane.f32.xlu0 %v1009_v63 }
 0x91b   :  { %1066 = vrot.lane.b32.xlu0 %v2075_v12, %s1956_s0  ;;  %s1960_s0 = smov [#allocation14]  }
 0x91c   :  { %s1461_s17 = sshll.u32 %s1960_s0, 4  ;;  %s1462_s17 = int_to_ptr.vmem [resolvable:$true] %s1461_s17 }
 0x91d   :  { %p1912_p3 = scmp.lt.s32.totalorder %s1462_s17, %s1462_s17 }
 0x91f   :  { %885 = vrot.lane.b32.xlu0 %v1528_v1, %s1958_s18 }
 0x98a   :  { %v1008_v2 = vpop.xlane.xlu0 %1007 }
 0x98b   :  { %1775 = vrcp.f32 %v1008_v2 }
 0x98e   :  { %v1011_v4 = vpop.xlane.xlu0 %1010 }
 0x98f   :  { %1777 = vrcp.f32 %v1011_v4  ;;  %v1511_v4 = vld [vmem:[#allocation11] ss:$0 sm:$0xff] }
 0x992   :  { %v1067_v5 = vpop.permute.xlu0 %1066 }
 0x993   :  { %v1072_v6 = vsel %vm321_vm3, %v1067_v5, 0 }
 0x994   :  { %1677 = vmatpush3.bf16.msra.mxu0 %v1072_v6 }
 0x995   :  { %1690 = vmatprep.subr.bf16.mxu0 %v1945_v0 }
 0x996   :  { %v886_v7 = vpop.permute.xlu0 %885 }
 0x997   :  { %892 = vst.msk [vmem:[#allocation2] sm:$0xf] %vm891_vm6, %v886_v7 }
 0x998   :  { %v1776_v9 = vpop.eup %1775 }
 0x999   :  { %v1014_v10 = vmul.f32 %v1776_v9, %v1772_v59 }
 0x99b   :  { %v1016_v11 = vpack.c.bf16 %v1014_v10, %v1014_v10  ;;  %v1743_v10 = vld [vmem:[%s2278_s9 + $0x10] sm:$0xff]  }
 0x99c   :  { %v1778_v13 = vpop.eup %1777 }
 0x99d   :  { %1673 = vmatmul.mubr.msk.bf16.vlgmr.msra.gmra.mxu1 %vm196_vm2, %v1016_v11  ;;  %v1015_v12 = vmul.f32 %v1778_v13, %v1774_v62  ;;  %v1510_v62 = vld [vmem:[#allocation9] ss:$0 sm:$0xff]  ;;  %v1744_v11 = vld [vmem:[%s2278_s9 + $0x8] sm:$0xff]   ;;  %v1745_v13 = vld [vmem:[%s2278_s9] sm:$0xff]  }
 0x99e   :  { %1686 = vmatprep.mubr.msk.bf16.mxu1 %vm1946_vm0, %v1945_v0  ;;  %1683 = vmatpush3.bf16.msra.mxu1 %v1737_v15 }
 0x99f   :  { %v1017_v14 = vpack.c.bf16 %v1015_v12, %v1015_v12  ;;  %1684 = vmatprep.subr.bf16.mxu1 %v1945_v0  ;;  %v1512_v12 = vld [vmem:[#allocation12] ss:$0 sm:$0xff] }
 0x9a1   :  { %1679 = vmatmul.mubr.msk.bf16.vlgmr.msra.gmra.mxu0 %vm196_vm2, %v1017_v14 }
 0x9a2   :  { %1694 = vmatprep.mubr.msk.bf16.mxu0 %vm1946_vm0, %v1945_v0  ;;  %1685 = vmatpush3.bf16.msra.mxu1 %v1738_v16 }
 0x9a3   :  { %1698 = vmatprep.subr.bf16.mxu1 %v1945_v0  ;;  %1691 = vmatpush3.bf16.msra.mxu0 %v1740_v54 }
 0x9a4   :  { %1692 = vmatprep.subr.bf16.mxu0 %v1945_v0 }
 0x9a7   :  { %1693 = vmatpush3.bf16.msra.mxu0 %v1741_v55 }
 0xa5d   :  { %v1060_v17 = vpop.f32.mrf.mxu1 }
 0xa5e   :  { %v1530_v18 = vpack.c.bf16 %v1060_v17, %v1060_v17 }
 0xa5f   :  { %v1674_v19 = vpop.f32.mrf.mxu1 }
 0xa60   :  { %1120 = vrot.lane.b32.xlu0 %v1530_v18, %s1959_s4 }
 0xa61   :  { %v1063_v20 = vpop.f32.mrf.mxu1  ;;  %v1108_v21 = vpop.f32.mrf.mxu0 }
 0xa62   :  { %v1531_v22 = vpack.c.bf16 %v1108_v21, %v1108_v21 }
 0xa63   :  { %v1675_v23 = vpop.f32.mrf.mxu1  ;;  %v1680_v24 = vpop.f32.mrf.mxu0 }
 0xa64   :  { %1122 = vrot.lane.b32.xlu1 %v1531_v22, %s1959_s4 }
 0xa65   :  { %v1111_v25 = vpop.f32.mrf.mxu0 }
 0xa67   :  { %v1681_v26 = vpop.f32.mrf.mxu0 }
 0xad2   :  { %v1121_v27 = vpop.permute.xlu0 %1120 }
 0xad3   :  { %1127 = vst.msk [vmem:[#allocation2] sm:$0xf] %vm1126_vm7, %v1121_v27 }
 0xad6   :  { %v1123_v28 = vpop.permute.xlu1 %1122 }
 0xad7   :  { %1128 = vst.msk [vmem:[#allocation2 + $0x4] sm:$0xf] %vm1126_vm7, %v1123_v28 }
 0xade   :  { %v1739_v29 = vld [vmem:[#allocation2] sm:$0xff]  }
 0xadf   :  { %1687 = vmatmul.mubr.msk.bf16.vlgmr.msra.gmra.mxu1 %vm146_vm1, %v1739_v29 }
 0xae0   :  { %1706 = vmatprep.mubr.msk.bf16.mxu1 %vm1946_vm0, %v1945_v0  ;;  %1699 = vmatpush3.bf16.msra.mxu1 %v1742_v56 }
 0xae1   :  { %1700 = vmatprep.subr.bf16.mxu1 %v1945_v0 }
 0xae4   :  { %1701 = vmatpush3.bf16.msra.mxu1 %v1743_v10 }
 0xae5   :  { %1702 = vmatprep.subr.bf16.mxu1 %v1945_v0 }
 0xae8   :  { %1703 = vmatpush3.bf16.msra.mxu1 %v1744_v11 }
 0xae9   :  { %1704 = vmatprep.subr.bf16.mxu1 %v1945_v0  ;;  %v1516_v0 = vld [vmem:[%s2279_s10] ss:$0 sm:$0xff] }
 0xaec   :  { %1705 = vmatpush3.bf16.msra.mxu1 %v1745_v13 }
 0xb9f   :  { %v1196_v32 = vpop.f32.mrf.mxu1 }
 0xba0   :  { %v1197_v33 = vadd.f32 %v1505_v30, %v1196_v32 }
 0xba1   :  { %v1688_v34 = vpop.f32.mrf.mxu1 }
 0xba2   :  { %v1203_v35 = vadd.f32 %v1197_v33, %v120_v31 }
 0xba3   :  { %v1199_v37 = vpop.f32.mrf.mxu1 }
 0xba4   :  { %v1200_v38 = vadd.f32 %v1505_v30, %v1199_v37  ;;  %v1205_v39 = vsel %vm146_vm1, %v1203_v35, 0.0 }
 0xba5   :  { %v1689_v40 = vpop.f32.mrf.mxu1  ;;  %1206 = vadd.xlane.f32.xlu0 %v1205_v39 }
 0xba6   :  { %v1204_v41 = vadd.f32 %v1200_v38, %v121_v36 }
 0xba8   :  { %v1208_v42 = vsel %vm146_vm1, %v1204_v41, 0.0 }
 0xba9   :  { %1209 = vadd.xlane.f32.xlu1 %v1208_v42 }
 0xc2e   :  { %v1207_v44 = vpop.xlane.xlu0 %1206 }
 0xc2f   :  { %v1212_v45 = vmul.f32 0.03125, %v1207_v44 }
 0xc31   :  { %v1214_v47 = vsub.f32 %v1203_v35, %v1212_v45 }
 0xc32   :  { %v1210_v48 = vpop.xlane.xlu1 %1209 }
 0xc33   :  { %v1213_v49 = vmul.f32 0.03125, %v1210_v48  ;;  %v1216_v50 = vmul.f32 %v1214_v47, %v1214_v47 }
 0xc35   :  { %v1215_v51 = vsub.f32 %v1204_v41, %v1213_v49  ;;  %v1218_v52 = vsel %vm146_vm1, %v1216_v50, 0.0 }
 0xc36   :  { %1219 = vadd.xlane.f32.xlu0 %v1218_v52  ;;  %v1522_v52 = vld [vmem:[%s2280_s11] ss:$0 sm:$0xff]  ;;  %s1907_s11 = scalar_lea.vmem %s1462_s17, 128 }
 0xc37   :  { %v1217_v3 = vmul.f32 %v1215_v51, %v1215_v51  ;;  %p1908_p2 = scmp.ne.s32.totalorder %s1462_s17, %s1907_s11  ;;  %p1913_p4 = scmp.lt.s32.totalorder %s1907_s11, %s1907_s11 }
 0xc39   :  { %v1221_v53 = vsel %vm146_vm1, %v1217_v3, 0.0  ;;  %p1914_p5 = por %p1913_p4, %p1912_p3 }
 0xc3a   :  { %1222 = vadd.xlane.f32.xlu0 %v1221_v53  ;;  %v1523_v53 = vld [vmem:[%s2281_s12] ss:$0 sm:$0xff] }
 0xc3b   :  { %p1915_p6 = pnand %p1914_p5, %p1908_p2 }
 0xcbf   :  { %v1220_v57 = vpop.xlane.xlu0 %1219 }
 0xcc0   :  { %v1224_v8 = vmul.f32 0.03125, %v1220_v57 }
 0xcc2   :  { %v1226_v43 = vadd.f32 1e-05, %v1224_v8 }
 0xcc3   :  { %v1223_v46 = vpop.xlane.xlu0 %1222 }
 0xcc4   :  { %1779 = vrsqrt.f32 %v1226_v43  ;;  %v1225_v58 = vmul.f32 0.03125, %v1223_v46 }
 0xcc6   :  { %v1227_v59 = vadd.f32 1e-05, %v1225_v58 }
 0xcc8   :  { %1781 = vrsqrt.f32 %v1227_v59 }
 0xcd1   :  { %v1780_v60 = vpop.eup %1779 }
 0xcd2   :  { %v1230_v61 = vmul.f32 %v1780_v60, %v1214_v47 }
 0xcd4   :  { %v1239_v2 = vmul.f32 %v1510_v62, %v1230_v61 }
 0xcd5   :  { %v1782_v63 = vpop.eup %1781 }
 0xcd6   :  { %v1231_v1 = vmul.f32 %v1782_v63, %v1215_v51  ;;  %v1248_v6 = vadd.f32 %v1511_v4, %v1239_v2 }
 0xcd8   :  { %v1240_v5 = vmul.f32 %v1510_v62, %v1231_v1 }
 0xcda   :  { %v1249_v7 = vadd.f32 %v1511_v4, %v1240_v5 }
 0xcdc   :  { %v1250_v9 = vpack.c.bf16 %v1249_v7, %v1248_v6 }
 0xcde   :  { %1695 = vmatmul.mubr.msk.bf16.vlgmr.msra.gmra.mxu0 %vm146_vm1, %v1250_v9 }
 0xd9e   :  { %v1311_v14 = vpop.f32.mrf.mxu0 }
 0xd9f   :  { %v1312_v16 = vadd.f32 %v1512_v12, %v1311_v14 }
 0xda0   :  { %v1696_v15 = vpop.f32.mrf.mxu0 }
 0xda1   :  { %v1318_v20 = vmax.f32 %v1312_v16, 0.0 }
 0xda2   :  { %v1314_v17 = vpop.f32.mrf.mxu0 }
 0xda3   :  { %v1315_v18 = vadd.f32 %v1512_v12, %v1314_v17 }
 0xda4   :  { %v1697_v19 = vpop.f32.mrf.mxu0 }
 0xda5   :  { %v1319_v21 = vmax.f32 %v1315_v18, 0.0 }
 0xda7   :  { %v1320_v22 = vpack.c.bf16 %v1319_v21, %v1318_v20 }
 0xda9   :  { %1707 = vmatmul.mubr.msk.bf16.vlgmr.msra.gmra.mxu1 %vm1360_vm8, %v1320_v22 }
 0xe69   :  { %v1398_v23 = vpop.f32.mrf.mxu1 }
 0xe6a   :  { %v1399_v24 = vadd.f32 %v1516_v0, %v1398_v23 }
 0xe6b   :  { %v1708_v25 = vpop.f32.mrf.mxu1 }
 0xe6c   :  { %v1405_v26 = vadd.f32 %v1399_v24, %v1248_v6 }
 0xe6d   :  { %v1401_v27 = vpop.f32.mrf.mxu1 }
 0xe6e   :  { %v1402_v28 = vadd.f32 %v1516_v0, %v1401_v27  ;;  %v1407_v29 = vsel %vm146_vm1, %v1405_v26, 0.0 }
 0xe6f   :  { %1408 = vadd.xlane.f32.xlu1 %v1407_v29  ;;  %v1709_v30 = vpop.f32.mrf.mxu1 }
 0xe70   :  { %v1406_v31 = vadd.f32 %v1402_v28, %v1249_v7 }
 0xe72   :  { %v1410_v32 = vsel %vm146_vm1, %v1406_v31, 0.0 }
 0xe73   :  { %1411 = vadd.xlane.f32.xlu0 %v1410_v32 }
 0xef8   :  { %v1409_v33 = vpop.xlane.xlu1 %1408 }
 0xef9   :  { %v1413_v34 = vmul.f32 0.03125, %v1409_v33 }
 0xefb   :  { %v1415_v35 = vsub.f32 %v1405_v26, %v1413_v34 }
 0xefc   :  { %v1412_v36 = vpop.xlane.xlu0 %1411 }
 0xefd   :  { %v1414_v37 = vmul.f32 0.03125, %v1412_v36  ;;  %v1417_v38 = vmul.f32 %v1415_v35, %v1415_v35 }
 0xeff   :  { %v1416_v39 = vsub.f32 %v1406_v31, %v1414_v37  ;;  %v1419_v40 = vsel %vm146_vm1, %v1417_v38, 0.0 }
 0xf00   :  { %1420 = vadd.xlane.f32.xlu1 %v1419_v40 }
 0xf01   :  { %v1418_v41 = vmul.f32 %v1416_v39, %v1416_v39 }
 0xf03   :  { %v1422_v42 = vsel %vm146_vm1, %v1418_v41, 0.0 }
 0xf04   :  { %1423 = vadd.xlane.f32.xlu0 %v1422_v42 }
 0xf89   :  { %v1421_v44 = vpop.xlane.xlu1 %1420 }
 0xf8a   :  { %v1425_v45 = vmul.f32 0.03125, %v1421_v44 }
 0xf8c   :  { %v1427_v47 = vadd.f32 1e-05, %v1425_v45 }
 0xf8d   :  { %v1424_v48 = vpop.xlane.xlu0 %1423 }
 0xf8e   :  { %1783 = vrsqrt.f32 %v1427_v47  ;;  %v1426_v49 = vmul.f32 0.03125, %v1424_v48 }
 0xf90   :  { %v1428_v50 = vadd.f32 1e-05, %v1426_v49 }
 0xf92   :  { %1785 = vrsqrt.f32 %v1428_v50 }
 0xf9b   :  { %v1784_v51 = vpop.eup %1783 }
 0xf9c   :  { %v1431_v3 = vmul.f32 %v1784_v51, %v1415_v35 }
 0xf9e   :  { %v1440_v54 = vmul.f32 %v1522_v52, %v1431_v3 }
 0xf9f   :  { %v1786_v55 = vpop.eup %1785 }
 0xfa0   :  { %v1432_v56 = vmul.f32 %v1786_v55, %v1416_v39  ;;  %v1449_v57 = vadd.f32 %v1523_v53, %v1440_v54 }
 0xfa2   :  { %v1441_v8 = vmul.f32 %v1522_v52, %v1432_v56  ;;  %v1451_v43 = vpack.c.bf16 %v1449_v57, %v1449_v57 }
 0xfa4   :  { %v1450_v46 = vadd.f32 %v1523_v53, %v1441_v8  ;;  %1454 = vst.msk [vmem:[#allocation14] sm:$0xf] %vm1453_vm9, %v1451_v43 }
 0xfa6   :  { %v1452_v58 = vpack.c.bf16 %v1450_v46, %v1450_v46 }
 0xfa8   :  { %1455 = vst.msk [vmem:[#allocation14 + $0x4] sm:$0xf] %vm1453_vm9, %v1452_v58 }
 0xfa9   :  { %1918 = shalt.err (!%p1915_p6)
}
 0xfaa   :  { %1467 = dma.vmem_to_hbm [thread:$0]  %s1462_s17, 128, %s2282_s13, [#allocation5], %s1940_s2, %s1940_s2, %s1941_s23  }
 0xfab   :  { %1935 = dma.done.wait [#allocation5], 128  }
 0xfac   :  { %1936 = vsyncadd [#allocation5], 4294967168 }
 0xfad   :  { %1471 = vsyncpa [#allocation4], 1 }
 0xfae   :  { %1472 = vsyncpa [#allocation7], 1 }
 0xfaf   :  { %1473 = vsyncpa [#allocation10], 1 }
 0xfb0   :  { %1474 = vsyncpa [#allocation13], 1 }
 0xfb1   :  { %1475 = vsyncpa [#allocation5], 1 }

// kernel: tpu_custom_call.1
= control target key start
LH: loop header
LB: loop body
LE: loop exit
PB: predicated region body
PF: predicated region fallthrough
CT: control target
= control target key end

     0   :  { %18 = vsyncpa [#allocation4], 0  ;;  %s2269_s0 = inlined_call_operand.hbm [shape: bf16[2,8,32], index: 0, kind: input, shape index: {}]   ;;  %s2270_s1 = inlined_call_operand.vmem [shape: bf16[32,96], index: 1, kind: input, shape index: {}]   ;;  %s2271_s2 = inlined_call_operand.hbm [shape: f32[1,96], index: 2, kind: input, shape index: {}]   ;;  %s2272_s3 = inlined_call_operand.vmem [shape: bf16[32,32], index: 3, kind: input, shape index: {}]   ;;  %s2273_s4 = inlined_call_operand.hbm [shape: f32[1,32], index: 4, kind: input, shape index: {}]   ;;  %s2274_s5 = inlined_call_operand.hbm [shape: f32[1,32], index: 5, kind: input, shape index: {}]   ;;  %s2275_s6 = inlined_call_operand.hbm [shape: f32[1,32], index: 6, kind: input, shape index: {}]   ;;  %s2276_s7 = inlined_call_operand.vmem [shape: bf16[32,64], index: 7, kind: input, shape index: {}]   ;;  %s2277_s8 = inlined_call_operand.hbm [shape: f32[1,64], index: 8, kind: input, shape index: {}]   ;;  %s2278_s9 = inlined_call_operand.vmem [shape: bf16[64,32], index: 9, kind: input, shape index: {}]   ;;  %s2279_s10 = inlined_call_operand.vmem [shape: f32[1,32], index: 10, kind: input, shape index: {}]   ;;  %s2280_s11 = inlined_call_operand.vmem [shape: f32[1,32], index: 11, kind: input, shape index: {}]   ;;  %s2281_s12 = inlined_call_operand.vmem [shape: f32[1,32], index: 12, kind: input, shape index: {}]   ;;  %s2282_s13 = inlined_call_operand.hbm [shape: bf16[2,8,32], index: 13, kind: output, shape index: {}]  }
   0x1   :  { %19 = vsyncpa [#allocation7], 0 }
   0x2   :  { %20 = vsyncpa [#allocation10], 0 }
   0x3   :  { %21 = vsyncpa [#allocation13], 0 }
   0x4   :  { %22 = vsyncpa [#allocation5], 0  ;;  %s1937_s25 = smov [#allocation6]   ;;  %s1938_s27 = smov [#allocation9]  }
   0x5   :  { %s43_s26 = sshll.u32 %s1937_s25, 4  ;;  %s65_s28 = sshll.u32 %s1938_s27, 4  ;;  %s44_s26 = int_to_ptr.vmem [resolvable:$true] %s43_s26  ;;  %s66_s28 = int_to_ptr.vmem [resolvable:$true] %s65_s28 }
   0x6   :  { %s1795_s29 = scalar_lea.vmem %s44_s26, 16  ;;  %s1799_s30 = scalar_lea.vmem %s44_s26, 32 }
   0x7   :  { %p1796_p0 = scmp.ne.s32.totalorder %s44_s26, %s1795_s29  ;;  %p1800_p1 = scmp.lt.s32.totalorder %s44_s26, %s44_s26 }
   0x8   :  { %p1801_p2 = scmp.lt.s32.totalorder %s1799_s30, %s1795_s29 }
   0xa   :  { %p1802_p3 = por %p1801_p2, %p1800_p1 }
   0xc   :  { %p1803_p4 = pnand %p1802_p3, %p1796_p0 }
   0xe   :  { %1806 = shalt.err (!%p1803_p4)
}
   0xf   :  { %46 = dma.hbm_to_vmem [thread:$0]  %s2271_s2, 16, %s44_s26, [#allocation7]  }
  0x10   :  { %s1815_s16 = scalar_lea.vmem %s66_s28, 16  ;;  %s1819_s17 = scalar_lea.vmem %s66_s28, 32 }
  0x11   :  { %p1816_p5 = scmp.ne.s32.totalorder %s66_s28, %s1815_s16  ;;  %p1820_p6 = scmp.lt.s32.totalorder %s66_s28, %s66_s28 }
  0x12   :  { %p1821_p7 = scmp.lt.s32.totalorder %s1819_s17, %s1815_s16 }
  0x14   :  { %p1822_p8 = por %p1821_p7, %p1820_p6 }
  0x16   :  { %p1823_p9 = pnand %p1822_p8, %p1816_p5 }
  0x18   :  { %1826 = shalt.err (!%p1823_p9)
}
  0x19   :  { %68 = dma.hbm_to_vmem [thread:$0]  %s2274_s5, 16, %s66_s28, [#allocation10]  }
  0x1a   :  { %s1939_s20 = smov [#allocation3]  }
  0x1b   :  { %s28_s21 = sshll.u32 %s1939_s20, 4  ;;  %s29_s21 = int_to_ptr.vmem [resolvable:$true] %s28_s21 }
  0x1c   :  { %s1835_s22 = scalar_lea.vmem %s29_s21, 128  ;;  %p1840_p11 = scmp.lt.s32.totalorder %s29_s21, %s29_s21 }
  0x1d   :  { %p1836_p10 = scmp.ne.s32.totalorder %s29_s21, %s1835_s22  ;;  %p1841_p12 = scmp.lt.s32.totalorder %s1835_s22, %s1835_s22 }
  0x1f   :  { %p1842_p13 = por %p1841_p12, %p1840_p11 }
  0x21   :  { %p1843_p0 = pnand %p1842_p13, %p1836_p10 }
  0x23   :  { %1846 = shalt.err (!%p1843_p0)
}
  0x24   :  { %s1940_s2 = smov 64   ;;  %s1941_s23 = smov 4  }
  0x25   :  { %34 = dma.hbm_to_vmem [thread:$0]  %s2269_s0, 128, %s29_s21, [#allocation4], %s1940_s2, %s1940_s2, %s1941_s23  }
  0x26   :  { %s1942_s5 = smov [#allocation8]   ;;  %s1943_s27 = smov [#allocation11]  }
  0x27   :  { %s55_s26 = sshll.u32 %s1942_s5, 4  ;;  %s75_s28 = sshll.u32 %s1943_s27, 4  ;;  %s56_s26 = int_to_ptr.vmem [resolvable:$true] %s55_s26  ;;  %s76_s28 = int_to_ptr.vmem [resolvable:$true] %s75_s28 }
  0x28   :  { %s1855_s29 = scalar_lea.vmem %s56_s26, 16  ;;  %s1859_s30 = scalar_lea.vmem %s56_s26, 32 }
  0x29   :  { %p1856_p1 = scmp.ne.s32.totalorder %s56_s26, %s1855_s29  ;;  %p1860_p2 = scmp.lt.s32.totalorder %s56_s26, %s56_s26 }
  0x2a   :  { %p1861_p3 = scmp.lt.s32.totalorder %s1859_s30, %s1855_s29 }
  0x2c   :  { %p1862_p4 = por %p1861_p3, %p1860_p2 }
  0x2e   :  { %p1863_p5 = pnand %p1862_p4, %p1856_p1 }
  0x30   :  { %1866 = shalt.err (!%p1863_p5)
}
  0x31   :  { %58 = dma.hbm_to_vmem [thread:$0]  %s2273_s4, 16, %s56_s26, [#allocation7]  }
  0x32   :  { %s1875_s16 = scalar_lea.vmem %s76_s28, 16  ;;  %s1879_s0 = scalar_lea.vmem %s76_s28, 32 }
  0x33   :  { %p1876_p6 = scmp.ne.s32.totalorder %s76_s28, %s1875_s16  ;;  %p1880_p7 = scmp.lt.s32.totalorder %s76_s28, %s76_s28 }
  0x34   :  { %p1881_p8 = scmp.lt.s32.totalorder %s1879_s0, %s1875_s16 }
  0x36   :  { %p1882_p9 = por %p1881_p8, %p1880_p7 }
  0x38   :  { %p1883_p10 = pnand %p1882_p9, %p1876_p6 }
  0x3a   :  { %1886 = shalt.err (!%p1883_p10)
}
  0x3b   :  { %78 = dma.hbm_to_vmem [thread:$0]  %s2275_s6, 16, %s76_s28, [#allocation10]  }
  0x3c   :  { %s1944_s19 = smov [#allocation12]  }
  0x3d   :  { %s87_s20 = sshll.u32 %s1944_s19, 4  ;;  %s88_s20 = int_to_ptr.vmem [resolvable:$true] %s87_s20 }
  0x3e   :  { %s1895_s21 = scalar_lea.vmem %s88_s20, 16  ;;  %s1899_s22 = scalar_lea.vmem %s88_s20, 32 }
  0x3f   :  { %p1896_p11 = scmp.ne.s32.totalorder %s88_s20, %s1895_s21  ;;  %p1900_p12 = scmp.lt.s32.totalorder %s88_s20, %s88_s20 }
  0x40   :  { %p1901_p13 = scmp.lt.s32.totalorder %s1899_s22, %s1895_s21 }
  0x42   :  { %p1902_p0 = por %p1901_p13, %p1900_p12 }
  0x44   :  { %p1903_p1 = pnand %p1902_p0, %p1896_p11 }
  0x46   :  { %1906 = shalt.err (!%p1903_p1)
}
  0x47   :  { %90 = dma.hbm_to_vmem [thread:$0]  %s2277_s8, 16, %s88_s20, [#allocation13]  }
  0x48   :  { %1927 = dma.done.wait [#allocation4], 128  }
  0x49   :  { %1928 = vsyncadd [#allocation4], 4294967168 }
  0x4a   :  { %1929 = dma.done.wait [#allocation7], 32  }
  0x4b   :  { %1930 = vsyncadd [#allocation7], 4294967264 }
  0x4c   :  { %1931 = dma.done.wait [#allocation10], 32  }
  0x4d   :  { %1932 = vsyncadd [#allocation10], 4294967264 }
  0x4e   :  { %1933 = dma.done.wait [#allocation13], 16  }
  0x4f   :  { %1934 = vsyncadd [#allocation13], 4294967280  ;;  %v1945_v0 = vmov 0.0   ;;  %vm1946_vm0 = vmmov 0   ;;  %v1734_v1 = vld [vmem:[%s2270_s1 + $0x8] sm:$0xff]   ;;  %v1735_v2 = vld [vmem:[%s2270_s1] sm:$0xff]  }
  0x50   :  { %1578 = vmatprep.subr.bf16.mxu0 %v1945_v0  ;;  %1582 = vmatprep.mubr.msk.bf16.mxu0 %vm1946_vm0, %v1945_v0  ;;  %v2064_v3 = vld [vmem:[#allocation3] sm:$0xff]   ;;  %vm146_vm1 = vcmask 261120   ;;  %v1477_v4 = vld [vmem:[#allocation6] ss:$0 sm:$0xff]  ;;  %s1947_s1 = smov 96   ;;  %vm196_vm2 = vcmask 64512  }
  0x51   :  { %1586 = vmatprep.subr.bf16.mxu1 %v1945_v0  ;;  %1588 = vmatprep.mubr.msk.bf16.mxu1 %vm1946_vm0, %v1945_v0  ;;  %s1948_s26 = smov 88   ;;  %vm321_vm3 = vcmask 1043456   ;;  %s1949_s27 = smov 120   ;;  %vm421_vm4 = vcmask 60416   ;;  %vm656_vm5 = vcmask 126016   ;;  %vm891_vm6 = vcmask 191616  }
  0x52   :  { %1579 = vmatpush3.bf16.msra.mxu0 %v1734_v1  ;;  %s1950_s28 = smov 56   ;;  %s1951_s29 = smov 80   ;;  %vm1126_vm7 = vcmask 257216   ;;  %vm1360_vm8 = vcmask 523264   ;;  %vm1453_vm9 = vcmask 257024  }
  0x53   :  { %1580 = vmatprep.subr.bf16.mxu0 %v1945_v0  ;;  %s1952_s30 = smov 112   ;;  %s1953_s14 = smov 48  }
  0x54   :  { %s1954_s15 = smov 72   ;;  %s1955_s16 = smov 104  }
  0x55   :  { %s1956_s0 = smov 40   ;;  %s1957_s17 = smov 8  }
  0x56   :  { %1581 = vmatpush3.bf16.msra.mxu0 %v1735_v2  ;;  %s1958_s18 = smov 16   ;;  %s1959_s4 = smov 24  }
  0x57   :  { %1592 = vmatprep.subr.bf16.mxu0 %v1945_v0 }
  0x59   :  { %1583 = vmatmul.mubr.msk.bf16.vlgmr.msra.gmra.mxu0 %vm146_vm1, %v2064_v3 }
  0x5a   :  { %1594 = vmatprep.mubr.msk.bf16.mxu0 %vm1946_vm0, %v1945_v0 }
 0x119   :  { %v184_v5 = vpop.f32.mrf.mxu0 }
 0x11a   :  { %v185_v6 = vadd.f32 %v1477_v4, %v184_v5 }
 0x11b   :  { %v1584_v7 = vpop.f32.mrf.mxu0 }
 0x11c   :  { %v2072_v8 = vpack.c.bf16 %v185_v6, %v185_v6 }
 0x11d   :  { %v187_v9 = vpop.f32.mrf.mxu0 }
 0x11e   :  { %v188_v10 = vadd.f32 %v1477_v4, %v187_v9  ;;  %194 = vrot.lane.b32.xlu0 %v2072_v8, %s1947_s1 }
 0x11f   :  { %v1585_v11 = vpop.f32.mrf.mxu0 }
 0x120   :  { %v2075_v12 = vpack.c.bf16 %v188_v10, %v188_v10 }
 0x122   :  { %244 = vrot.lane.b32.xlu0 %v2075_v12, %s1947_s1 }
 0x190   :  { %v195_v13 = vpop.permute.xlu0 %194 }
 0x191   :  { %v201_v14 = vsel %vm196_vm2, %v195_v13, 0 }
 0x192   :  { %1587 = vmatpush3.bf16.xpose.msra.mxu1 %v201_v14 }
 0x193   :  { %1598 = vmatprep.subr.bf16.mxu1 %v1945_v0 }
 0x194   :  { %v245_v15 = vpop.permute.xlu0 %244 }
 0x195   :  { %v250_v16 = vsel %vm196_vm2, %v245_v15, 0 }
 0x196   :  { %1593 = vmatpush3.bf16.xpose.msra.mxu0 %v250_v16 }
 0x197   :  { %1604 = vmatprep.subr.bf16.mxu0 %v1945_v0 }
 0x199   :  { %1589 = vmatmul.mubr.msk.bf16.vlgmr.msra.gmra.mxu1 %vm196_vm2, %v2072_v8 }
 0x19a   :  { %1600 = vmatprep.mubr.msk.bf16.mxu1 %vm1946_vm0, %v1945_v0 }
 0x19d   :  { %1595 = vmatmul.mubr.msk.bf16.vlgmr.msra.gmra.mxu0 %vm196_vm2, %v2075_v12 }
 0x19e   :  { %1606 = vmatprep.mubr.msk.bf16.mxu0 %vm1946_vm0, %v1945_v0 }
 0x259   :  { %v237_v17 = vpop.f32.mrf.mxu1 }
 0x25a   :  { %v292_v18 = vsel %vm196_vm2, %v237_v17, -inf }
 0x25b   :  { %293 = vmax.xlane.f32.xlu1 %v292_v18  ;;  %v1590_v19 = vpop.f32.mrf.mxu1 }
 0x25d   :  { %v240_v20 = vpop.f32.mrf.mxu1  ;;  %v286_v21 = vpop.f32.mrf.mxu0 }
 0x25e   :  { %v295_v22 = vsel %vm196_vm2, %v286_v21, -inf }
 0x25f   :  { %v1591_v23 = vpop.f32.mrf.mxu1  ;;  %296 = vmax.xlane.f32.xlu1 %v295_v22  ;;  %v1596_v24 = vpop.f32.mrf.mxu0 }
 0x261   :  { %v289_v25 = vpop.f32.mrf.mxu0 }
 0x263   :  { %v1597_v26 = vpop.f32.mrf.mxu0 }
 0x270   :  { %316 = vrot.lane.b32.xlu1 %v2072_v8, %s1940_s2 }
 0x274   :  { %365 = vrot.lane.b32.xlu1 %v2075_v12, %s1940_s2 }
 0x278   :  { %426 = vrot.lane.b32.xlu1 %v2072_v8, %s1948_s26 }
 0x2e4   :  { %v294_v27 = vpop.xlane.xlu1 %293 }
 0x2e5   :  { %v298_v28 = vsub.f32 %v237_v17, %v294_v27 }
 0x2e7   :  { %v300_v29 = vmul.f32 1.442695, %v298_v28 }
 0x2e8   :  { %v297_v30 = vpop.xlane.xlu1 %296 }
 0x2e9   :  { %1747 = vpow2.f32 %v300_v29  ;;  %v299_v31 = vsub.f32 %v286_v21, %v297_v30 }
 0x2eb   :  { %v302_v32 = vmul.f32 1.442695, %v299_v31 }
 0x2ec   :  { %v317_v33 = vpop.permute.xlu1 %316 }
 0x2ed   :  { %1749 = vpow2.f32 %v302_v32  ;;  %v323_v34 = vsel %vm321_vm3, %v317_v33, 0 }
 0x2ee   :  { %1599 = vmatpush3.bf16.msra.mxu1 %v323_v34 }
 0x2ef   :  { %1610 = vmatprep.subr.bf16.mxu1 %v1945_v0 }
 0x2f0   :  { %v366_v35 = vpop.permute.xlu1 %365 }
 0x2f1   :  { %v371_v36 = vsel %vm321_vm3, %v366_v35, 0 }
 0x2f2   :  { %1605 = vmatpush3.bf16.msra.mxu0 %v371_v36 }
 0x2f3   :  { %1616 = vmatprep.subr.bf16.mxu0 %v1945_v0 }
 0x2f4   :  { %v427_v41 = vpop.permute.xlu1 %426 }
 0x2f5   :  { %v432_v48 = vsel %vm196_vm2, %v427_v41, 0 }
 0x2f6   :  { %v1748_v37 = vpop.eup %1747 }
 0x2f7   :  { %v304_v38 = vsel %vm196_vm2, %v1748_v37, 0.0 }
 0x2f8   :  { %305 = vadd.xlane.f32.xlu0 %v304_v38 }
 0x2fa   :  { %v1750_v39 = vpop.eup %1749 }
 0x2fb   :  { %v307_v40 = vsel %vm196_vm2, %v1750_v39, 0.0 }
 0x2fc   :  { %308 = vadd.xlane.f32.xlu1 %v307_v40 }
 0x30d   :  { %476 = vrot.lane.b32.xlu1 %v2075_v12, %s1948_s26 }
 0x30e   :  { %424 = vrot.lane.b32.xlu0 %v2072_v8, %s1949_s27 }
 0x311   :  { %474 = vrot.lane.b32.xlu1 %v2075_v12, %s1949_s27 }
 0x381   :  { %v306_v42 = vpop.xlane.xlu0 %305 }
 0x382   :  { %1751 = vrcp.f32 %v306_v42 }
 0x385   :  { %v309_v43 = vpop.xlane.xlu1 %308  ;;  %v425_v53 = vpop.permute.xlu0 %424 }
 0x386   :  { %1753 = vrcp.f32 %v309_v43 }
 0x389   :  { %v477_v50 = vpop.permute.xlu1 %476 }
 0x38a   :  { %v482_v52 = vsel %vm196_vm2, %v477_v50, 0 }
 0x38d   :  { %v475_v54 = vpop.permute.xlu1 %474 }
 0x38f   :  { %v1752_v44 = vpop.eup %1751 }
 0x390   :  { %v312_v45 = vmul.f32 %v1752_v44, %v1748_v37 }
 0x392   :  { %v314_v46 = vpack.c.bf16 %v312_v45, %v312_v45 }
 0x393   :  { %v1754_v47 = vpop.eup %1753 }
 0x394   :  { %1601 = vmatmul.mubr.msk.bf16.vlgmr.msra.gmra.mxu1 %vm196_vm2, %v314_v46  ;;  %v313_v49 = vmul.f32 %v1754_v47, %v1750_v39 }
 0x395   :  { %1611 = vmatpush3.bf16.xpose.msra.mxu1 %v432_v48  ;;  %1612 = vmatprep.mubr.msk.bf16.mxu1 %vm1946_vm0, %v1945_v0 }
 0x396   :  { %v315_v51 = vpack.c.bf16 %v313_v49, %v313_v49  ;;  %1622 = vmatprep.subr.bf16.mxu1 %v1945_v0 }
 0x398   :  { %1607 = vmatmul.mubr.msk.bf16.vlgmr.msra.gmra.mxu0 %vm196_vm2, %v315_v51 }
 0x399   :  { %1617 = vmatpush3.bf16.xpose.msra.mxu0 %v482_v52  ;;  %1618 = vmatprep.mubr.msk.bf16.mxu0 %vm1946_vm0, %v1945_v0 }
 0x39a   :  { %1628 = vmatprep.subr.bf16.mxu0 %v1945_v0 }
 0x39c   :  { %1613 = vmatmul.mubr.msk.bf16.vlgmr.msra.gmra.mxu1 %vm196_vm2, %v425_v53 }
 0x39d   :  { %1624 = vmatprep.mubr.msk.bf16.mxu1 %vm1946_vm0, %v1945_v0 }
 0x3a0   :  { %1619 = vmatmul.mubr.msk.bf16.vlgmr.msra.gmra.mxu0 %vm196_vm2, %v475_v54 }
 0x3a1   :  { %1630 = vmatprep.mubr.msk.bf16.mxu0 %vm1946_vm0, %v1945_v0 }
 0x454   :  { %v359_v55 = vpop.f32.mrf.mxu1 }
 0x455   :  { %v1524_v56 = vpack.c.bf16 %v359_v55, %v359_v55 }
 0x456   :  { %v1602_v57 = vpop.f32.mrf.mxu1 }
 0x457   :  { %422 = vst.msk [vmem:[#allocation2] sm:$0xf] %vm421_vm4, %v1524_v56 }
 0x458   :  { %v362_v58 = vpop.f32.mrf.mxu1  ;;  %v407_v59 = vpop.f32.mrf.mxu0 }
 0x459   :  { %v1525_v60 = vpack.c.bf16 %v407_v59, %v407_v59 }
 0x45a   :  { %v1603_v61 = vpop.f32.mrf.mxu1  ;;  %v1608_v62 = vpop.f32.mrf.mxu0 }
 0x45b   :  { %423 = vst.msk [vmem:[#allocation2 + $0x4] sm:$0xf] %vm421_vm4, %v1525_v60 }
 0x45c   :  { %v410_v63 = vpop.f32.mrf.mxu0  ;;  %v468_v1 = vpop.f32.mrf.mxu1 }
 0x45d   :  { %v524_v2 = vsel %vm196_vm2, %v468_v1, -inf }
 0x45e   :  { %525 = vmax.xlane.f32.xlu1 %v524_v2  ;;  %v1609_v4 = vpop.f32.mrf.mxu0  ;;  %v1614_v5 = vpop.f32.mrf.mxu1 }
 0x460   :  { %v471_v6 = vpop.f32.mrf.mxu1  ;;  %v518_v7 = vpop.f32.mrf.mxu0 }
 0x461   :  { %v527_v9 = vsel %vm196_vm2, %v518_v7, -inf }
 0x462   :  { %v1615_v10 = vpop.f32.mrf.mxu1  ;;  %528 = vmax.xlane.f32.xlu0 %v527_v9  ;;  %v1620_v11 = vpop.f32.mrf.mxu0 }
 0x464   :  { %v521_v13 = vpop.f32.mrf.mxu0 }
 0x466   :  { %v1621_v14 = vpop.f32.mrf.mxu0 }
 0x46f   :  { %548 = vrot.lane.b32.xlu1 %v2072_v8, %s1950_s28 }
 0x473   :  { %661 = vrot.lane.b32.xlu1 %v2072_v8, %s1951_s29 }
 0x478   :  { %596 = vrot.lane.b32.xlu0 %v2075_v12, %s1950_s28 }
 0x47c   :  { %659 = vrot.lane.b32.xlu0 %v2072_v8, %s1952_s30 }
 0x4e7   :  { %v526_v15 = vpop.xlane.xlu1 %525 }
 0x4e8   :  { %v530_v16 = vsub.f32 %v468_v1, %v526_v15 }
 0x4ea   :  { %v532_v17 = vmul.f32 1.442695, %v530_v16 }
 0x4eb   :  { %v549_v18 = vpop.permute.xlu1 %548  ;;  %v529_v19 = vpop.xlane.xlu0 %528 }
 0x4ec   :  { %1755 = vpow2.f32 %v532_v17  ;;  %v554_v20 = vsel %vm321_vm3, %v549_v18, 0  ;;  %v531_v21 = vsub.f32 %v518_v7, %v529_v19 }
 0x4ed   :  { %1623 = vmatpush3.bf16.msra.mxu1 %v554_v20 }
 0x4ee   :  { %v534_v22 = vmul.f32 1.442695, %v531_v21  ;;  %1634 = vmatprep.subr.bf16.mxu1 %v1945_v0 }
 0x4ef   :  { %v597_v23 = vpop.permute.xlu0 %596  ;;  %v662_v29 = vpop.permute.xlu1 %661 }
 0x4f0   :  { %1757 = vpow2.f32 %v534_v22  ;;  %v602_v24 = vsel %vm321_vm3, %v597_v23, 0  ;;  %v667_v36 = vsel %vm196_vm2, %v662_v29, 0 }
 0x4f1   :  { %1629 = vmatpush3.bf16.msra.mxu0 %v602_v24 }
 0x4f2   :  { %1640 = vmatprep.subr.bf16.mxu0 %v1945_v0 }
 0x4f3   :  { %v660_v41 = vpop.permute.xlu0 %659 }
 0x4f9   :  { %v1756_v25 = vpop.eup %1755 }
 0x4fa   :  { %v536_v26 = vsel %vm196_vm2, %v1756_v25, 0.0 }
 0x4fb   :  { %537 = vadd.xlane.f32.xlu1 %v536_v26 }
 0x4fd   :  { %v1758_v27 = vpop.eup %1757 }
 0x4fe   :  { %v539_v28 = vsel %vm196_vm2, %v1758_v27, 0.0 }
 0x4ff   :  { %540 = vadd.xlane.f32.xlu1 %v539_v28 }
 0x510   :  { %711 = vrot.lane.b32.xlu1 %v2075_v12, %s1951_s29 }
 0x514   :  { %709 = vrot.lane.b32.xlu1 %v2075_v12, %s1952_s30 }
 0x584   :  { %v538_v30 = vpop.xlane.xlu1 %537 }
 0x585   :  { %1759 = vrcp.f32 %v538_v30 }
 0x588   :  { %v541_v31 = vpop.xlane.xlu1 %540 }
 0x589   :  { %1761 = vrcp.f32 %v541_v31 }
 0x58c   :  { %v712_v38 = vpop.permute.xlu1 %711 }
 0x58d   :  { %v717_v40 = vsel %vm196_vm2, %v712_v38, 0 }
 0x590   :  { %v710_v42 = vpop.permute.xlu1 %709 }
 0x592   :  { %v1760_v32 = vpop.eup %1759 }
 0x593   :  { %v544_v33 = vmul.f32 %v1760_v32, %v1756_v25 }
 0x595   :  { %v546_v34 = vpack.c.bf16 %v544_v33, %v544_v33 }
 0x596   :  { %v1762_v35 = vpop.eup %1761 }
 0x597   :  { %1625 = vmatmul.mubr.msk.bf16.vlgmr.msra.gmra.mxu1 %vm196_vm2, %v546_v34  ;;  %v545_v37 = vmul.f32 %v1762_v35, %v1758_v27 }
 0x598   :  { %1635 = vmatpush3.bf16.xpose.msra.mxu1 %v667_v36  ;;  %1636 = vmatprep.mubr.msk.bf16.mxu1 %vm1946_vm0, %v1945_v0 }
 0x599   :  { %v547_v39 = vpack.c.bf16 %v545_v37, %v545_v37  ;;  %1646 = vmatprep.subr.bf16.mxu1 %v1945_v0 }
 0x59b   :  { %1631 = vmatmul.mubr.msk.bf16.vlgmr.msra.gmra.mxu0 %vm196_vm2, %v547_v39 }
 0x59c   :  { %1641 = vmatpush3.bf16.xpose.msra.mxu0 %v717_v40  ;;  %1642 = vmatprep.mubr.msk.bf16.mxu0 %vm1946_vm0, %v1945_v0 }
 0x59d   :  { %1652 = vmatprep.subr.bf16.mxu0 %v1945_v0 }
 0x59f   :  { %1637 = vmatmul.mubr.msk.bf16.vlgmr.msra.gmra.mxu1 %vm196_vm2, %v660_v41 }
 0x5a0   :  { %1648 = vmatprep.mubr.msk.bf16.mxu1 %vm1946_vm0, %v1945_v0 }
 0x5a3   :  { %1643 = vmatmul.mubr.msk.bf16.vlgmr.msra.gmra.mxu0 %vm196_vm2, %v710_v42 }
 0x5a4   :  { %1654 = vmatprep.mubr.msk.bf16.mxu0 %vm1946_vm0, %v1945_v0 }
 0x657   :  { %v2152_v43 = vpop.f32.mrf.mxu1 }
 0x659   :  { %v1626_v44 = vpop.f32.mrf.mxu1 }
 0x65b   :  { %v593_v45 = vpop.f32.mrf.mxu1  ;;  %v2154_v46 = vpop.f32.mrf.mxu0 }
 0x65d   :  { %v1627_v47 = vpop.f32.mrf.mxu1  ;;  %v1632_v48 = vpop.f32.mrf.mxu0 }
 0x65f   :  { %v641_v49 = vpop.f32.mrf.mxu0  ;;  %v703_v50 = vpop.f32.mrf.mxu1 }
 0x660   :  { %v759_v51 = vsel %vm196_vm2, %v703_v50, -inf  ;;  %v1526_v49 = vpack.c.bf16 %v2152_v43, %v2152_v43 }
 0x661   :  { %760 = vmax.xlane.f32.xlu0 %v759_v51  ;;  %v1633_v52 = vpop.f32.mrf.mxu0  ;;  %v1638_v53 = vpop.f32.mrf.mxu1 }
 0x663   :  { %v706_v54 = vpop.f32.mrf.mxu1  ;;  %v753_v55 = vpop.f32.mrf.mxu0 }
 0x664   :  { %v762_v56 = vsel %vm196_vm2, %v753_v55, -inf }
 0x665   :  { %v1639_v57 = vpop.f32.mrf.mxu1  ;;  %763 = vmax.xlane.f32.xlu1 %v762_v56  ;;  %v1644_v58 = vpop.f32.mrf.mxu0 }
 0x667   :  { %v756_v59 = vpop.f32.mrf.mxu0 }
 0x669   :  { %v1645_v60 = vpop.f32.mrf.mxu0 }
 0x676   :  { %783 = vrot.lane.b32.xlu1 %v2072_v8, %s1953_s14 }
 0x67a   :  { %896 = vrot.lane.b32.xlu1 %v2072_v8, %s1954_s15 }
 0x67e   :  { %946 = vrot.lane.b32.xlu1 %v2075_v12, %s1954_s15 }
 0x682   :  { %944 = vrot.lane.b32.xlu1 %v2075_v12, %s1955_s16 }
 0x6ea   :  { %v761_v61 = vpop.xlane.xlu0 %760 }
 0x6eb   :  { %v765_v62 = vsub.f32 %v703_v50, %v761_v61  ;;  %v1527_v50 = vpack.c.bf16 %v2154_v46, %v2154_v46 }
 0x6ed   :  { %v767_v63 = vmul.f32 1.442695, %v765_v62 }
 0x6ee   :  { %v764_v1 = vpop.xlane.xlu1 %763 }
 0x6ef   :  { %1763 = vpow2.f32 %v767_v63  ;;  %v766_v2 = vsub.f32 %v753_v55, %v764_v1 }
 0x6f1   :  { %v769_v4 = vmul.f32 1.442695, %v766_v2 }
 0x6f2   :  { %v784_v5 = vpop.permute.xlu1 %783 }
 0x6f3   :  { %1765 = vpow2.f32 %v769_v4  ;;  %v789_v6 = vsel %vm321_vm3, %v784_v5, 0 }
 0x6f4   :  { %1647 = vmatpush3.bf16.msra.mxu1 %v789_v6 }
 0x6f5   :  { %1658 = vmatprep.subr.bf16.mxu1 %v1945_v0 }
 0x6f6   :  { %v897_v18 = vpop.permute.xlu1 %896 }
 0x6f7   :  { %v902_v22 = vsel %vm196_vm2, %v897_v18, 0 }
 0x6fa   :  { %v947_v24 = vpop.permute.xlu1 %946 }
 0x6fb   :  { %v952_v26 = vsel %vm196_vm2, %v947_v24, 0 }
 0x6fc   :  { %v1764_v7 = vpop.eup %1763 }
 0x6fd   :  { %v771_v9 = vsel %vm196_vm2, %v1764_v7, 0.0 }
 0x6fe   :  { %772 = vadd.xlane.f32.xlu0 %v771_v9  ;;  %v945_v28 = vpop.permute.xlu1 %944 }
 0x700   :  { %v1766_v10 = vpop.eup %1765 }
 0x701   :  { %v774_v11 = vsel %vm196_vm2, %v1766_v10, 0.0 }
 0x702   :  { %775 = vadd.xlane.f32.xlu0 %v774_v11 }
 0x718   :  { %831 = vrot.lane.b32.xlu0 %v2075_v12, %s1953_s14 }
 0x71c   :  { %894 = vrot.lane.b32.xlu0 %v2072_v8, %s1955_s16 }
 0x787   :  { %v773_v13 = vpop.xlane.xlu0 %772 }
 0x788   :  { %1767 = vrcp.f32 %v773_v13 }
 0x78b   :  { %v776_v14 = vpop.xlane.xlu0 %775 }
 0x78c   :  { %1769 = vrcp.f32 %v776_v14 }
 0x78f   :  { %v832_v15 = vpop.permute.xlu0 %831 }
 0x790   :  { %v837_v16 = vsel %vm321_vm3, %v832_v15, 0  ;;  %v1737_v15 = vld [vmem:[%s2272_s3 + $0x8] sm:$0xff]  }
 0x791   :  { %1653 = vmatpush3.bf16.msra.mxu0 %v837_v16  ;;  %v1738_v16 = vld [vmem:[%s2272_s3] sm:$0xff]  }
 0x792   :  { %1664 = vmatprep.subr.bf16.mxu0 %v1945_v0 }
 0x793   :  { %v895_v27 = vpop.permute.xlu0 %894 }
 0x795   :  { %v1768_v17 = vpop.eup %1767 }
 0x796   :  { %v779_v19 = vmul.f32 %v1768_v17, %v1764_v7 }
 0x798   :  { %v781_v20 = vpack.c.bf16 %v779_v19, %v779_v19 }
 0x799   :  { %v1770_v21 = vpop.eup %1769 }
 0x79a   :  { %1649 = vmatmul.mubr.msk.bf16.vlgmr.msra.gmra.mxu1 %vm196_vm2, %v781_v20  ;;  %v780_v23 = vmul.f32 %v1770_v21, %v1766_v10 }
 0x79b   :  { %1659 = vmatpush3.bf16.xpose.msra.mxu1 %v902_v22  ;;  %1660 = vmatprep.mubr.msk.bf16.mxu1 %vm1946_vm0, %v1945_v0 }
 0x79c   :  { %v782_v25 = vpack.c.bf16 %v780_v23, %v780_v23  ;;  %1670 = vmatprep.subr.bf16.mxu1 %v1945_v0 }
 0x79e   :  { %1655 = vmatmul.mubr.msk.bf16.vlgmr.msra.gmra.mxu0 %vm196_vm2, %v782_v25 }
 0x79f   :  { %1665 = vmatpush3.bf16.xpose.msra.mxu0 %v952_v26  ;;  %1666 = vmatprep.mubr.msk.bf16.mxu0 %vm1946_vm0, %v1945_v0 }
 0x7a0   :  { %1676 = vmatprep.subr.bf16.mxu0 %v1945_v0 }
 0x7a2   :  { %1661 = vmatmul.mubr.msk.bf16.vlgmr.msra.gmra.mxu1 %vm196_vm2, %v895_v27 }
 0x7a3   :  { %1672 = vmatprep.mubr.msk.bf16.mxu1 %vm1946_vm0, %v1945_v0 }
 0x7a6   :  { %1667 = vmatmul.mubr.msk.bf16.vlgmr.msra.gmra.mxu0 %vm196_vm2, %v945_v28 }
 0x7a7   :  { %1678 = vmatprep.mubr.msk.bf16.mxu0 %vm1946_vm0, %v1945_v0 }
 0x85a   :  { %v825_v29 = vpop.f32.mrf.mxu1 }
 0x85b   :  { %v1528_v1 = vpack.c.bf16 %v825_v29, %v825_v29 }
 0x85c   :  { %v1650_v30 = vpop.f32.mrf.mxu1 }
 0x85d   :  { %v1505_v30 = vld [vmem:[#allocation8] ss:$0 sm:$0xff] }
 0x85e   :  { %v828_v31 = vpop.f32.mrf.mxu1  ;;  %v873_v32 = vpop.f32.mrf.mxu0 }
 0x85f   :  { %v1529_v51 = vpack.c.bf16 %v873_v32, %v873_v32  ;;  %v120_v31 = vunpack.c.l.bf16 %v2064_v3 }
 0x860   :  { %v1651_v33 = vpop.f32.mrf.mxu1  ;;  %v1656_v34 = vpop.f32.mrf.mxu0 }
 0x862   :  { %v876_v35 = vpop.f32.mrf.mxu0  ;;  %v938_v36 = vpop.f32.mrf.mxu1 }
 0x863   :  { %v994_v37 = vsel %vm196_vm2, %v938_v36, -inf }
 0x864   :  { %995 = vmax.xlane.f32.xlu0 %v994_v37  ;;  %v1657_v38 = vpop.f32.mrf.mxu0  ;;  %v1662_v39 = vpop.f32.mrf.mxu1 }
 0x866   :  { %v941_v40 = vpop.f32.mrf.mxu1  ;;  %v988_v41 = vpop.f32.mrf.mxu0 }
 0x867   :  { %v997_v42 = vsel %vm196_vm2, %v988_v41, -inf }
 0x868   :  { %v1663_v44 = vpop.f32.mrf.mxu1  ;;  %998 = vmax.xlane.f32.xlu1 %v997_v42  ;;  %v1668_v45 = vpop.f32.mrf.mxu0 }
 0x86a   :  { %v991_v47 = vpop.f32.mrf.mxu0 }
 0x86c   :  { %v1669_v48 = vpop.f32.mrf.mxu0 }
 0x879   :  { %1018 = vrot.lane.b32.xlu1 %v2072_v8, %s1956_s0 }
 0x87d   :  { %650 = vrot.lane.b32.xlu1 %v1526_v49, %s1957_s17 }
 0x881   :  { %652 = vrot.lane.b32.xlu1 %v1527_v50, %s1957_s17 }
 0x885   :  { %887 = vrot.lane.b32.xlu1 %v1529_v51, %s1958_s18 }
 0x8ed   :  { %v996_v52 = vpop.xlane.xlu0 %995 }
 0x8ee   :  { %v1000_v53 = vsub.f32 %v938_v36, %v996_v52  ;;  %v121_v36 = vunpack.c.h.bf16 %v2064_v3 }
 0x8f0   :  { %v1002_v54 = vmul.f32 1.442695, %v1000_v53 }
 0x8f1   :  { %v999_v55 = vpop.xlane.xlu1 %998 }
 0x8f2   :  { %1771 = vpow2.f32 %v1002_v54  ;;  %v1001_v56 = vsub.f32 %v988_v41, %v999_v55  ;;  %v1740_v54 = vld [vmem:[%s2276_s7 + $0x8] sm:$0xff]   ;;  %v1741_v55 = vld [vmem:[%s2276_s7] sm:$0xff]  }
 0x8f4   :  { %v1004_v57 = vmul.f32 1.442695, %v1001_v56  ;;  %v1742_v56 = vld [vmem:[%s2278_s9 + $0x18] sm:$0xff]  }
 0x8f5   :  { %v1019_v8 = vpop.permute.xlu1 %1018 }
 0x8f6   :  { %1773 = vpow2.f32 %v1004_v57  ;;  %v1024_v43 = vsel %vm321_vm3, %v1019_v8, 0 }
 0x8f7   :  { %1671 = vmatpush3.bf16.msra.mxu1 %v1024_v43 }
 0x8f8   :  { %1682 = vmatprep.subr.bf16.mxu1 %v1945_v0 }
 0x8f9   :  { %v651_v46 = vpop.permute.xlu1 %650 }
 0x8fa   :  { %657 = vst.msk [vmem:[#allocation2] sm:$0xf] %vm656_vm5, %v651_v46 }
 0x8fd   :  { %v653_v58 = vpop.permute.xlu1 %652 }
 0x8fe   :  { %658 = vst.msk [vmem:[#allocation2 + $0x4] sm:$0xf] %vm656_vm5, %v653_v58 }
 0x8ff   :  { %v1772_v59 = vpop.eup %1771 }
 0x900   :  { %v1006_v60 = vsel %vm196_vm2, %v1772_v59, 0.0 }
 0x901   :  { %1007 = vadd.xlane.f32.xlu0 %v1006_v60  ;;  %v888_v61 = vpop.permute.xlu1 %887 }
 0x902   :  { %893 = vst.msk [vmem:[#allocation2 + $0x4] sm:$0xf] %vm891_vm6, %v888_v61 }
 0x903   :  { %v1774_v62 = vpop.eup %1773 }
 0x904   :  { %v1009_v63 = vsel %vm196_vm2, %v1774_v62, 0.0 }
 0x905   :  { %1010 = vadd.xlane.f32.xlu0 %v1009_v63 }
 0x91b   :  { %1066 = vrot.lane.b32.xlu0 %v2075_v12, %s1956_s0  ;;  %s1960_s0 = smov [#allocation14]  }
 0x91c   :  { %s1461_s17 = sshll.u32 %s1960_s0, 4  ;;  %s1462_s17 = int_to_ptr.vmem [resolvable:$true] %s1461_s17 }
 0x91d   :  { %p1912_p3 = scmp.lt.s32.totalorder %s1462_s17, %s1462_s17 }
 0x91f   :  { %885 = vrot.lane.b32.xlu0 %v1528_v1, %s1958_s18 }
 0x98a   :  { %v1008_v2 = vpop.xlane.xlu0 %1007 }
 0x98b   :  { %1775 = vrcp.f32 %v1008_v2 }
 0x98e   :  { %v1011_v4 = vpop.xlane.xlu0 %1010 }
 0x98f   :  { %1777 = vrcp.f32 %v1011_v4  ;;  %v1511_v4 = vld [vmem:[#allocation11] ss:$0 sm:$0xff] }
 0x992   :  { %v1067_v5 = vpop.permute.xlu0 %1066 }
 0x993   :  { %v1072_v6 = vsel %vm321_vm3, %v1067_v5, 0 }
 0x994   :  { %1677 = vmatpush3.bf16.msra.mxu0 %v1072_v6 }
 0x995   :  { %1690 = vmatprep.subr.bf16.mxu0 %v1945_v0 }
 0x996   :  { %v886_v7 = vpop.permute.xlu0 %885 }
 0x997   :  { %892 = vst.msk [vmem:[#allocation2] sm:$0xf] %vm891_vm6, %v886_v7 }
 0x998   :  { %v1776_v9 = vpop.eup %1775 }
 0x999   :  { %v1014_v10 = vmul.f32 %v1776_v9, %v1772_v59 }
 0x99b   :  { %v1016_v11 = vpack.c.bf16 %v1014_v10, %v1014_v10  ;;  %v1743_v10 = vld [vmem:[%s2278_s9 + $0x10] sm:$0xff]  }
 0x99c   :  { %v1778_v13 = vpop.eup %1777 }
 0x99d   :  { %1673 = vmatmul.mubr.msk.bf16.vlgmr.msra.gmra.mxu1 %vm196_vm2, %v1016_v11  ;;  %v1015_v12 = vmul.f32 %v1778_v13, %v1774_v62  ;;  %v1510_v62 = vld [vmem:[#allocation9] ss:$0 sm:$0xff]  ;;  %v1744_v11 = vld [vmem:[%s2278_s9 + $0x8] sm:$0xff]   ;;  %v1745_v13 = vld [vmem:[%s2278_s9] sm:$0xff]  }
 0x99e   :  { %1686 = vmatprep.mubr.msk.bf16.mxu1 %vm1946_vm0, %v1945_v0  ;;  %1683 = vmatpush3.bf16.msra.mxu1 %v1737_v15 }
 0x99f   :  { %v1017_v14 = vpack.c.bf16 %v1015_v12, %v1015_v12  ;;  %1684 = vmatprep.subr.bf16.mxu1 %v1945_v0  ;;  %v1512_v12 = vld [vmem:[#allocation12] ss:$0 sm:$0xff] }
 0x9a1   :  { %1679 = vmatmul.mubr.msk.bf16.vlgmr.msra.gmra.mxu0 %vm196_vm2, %v1017_v14 }
 0x9a2   :  { %1694 = vmatprep.mubr.msk.bf16.mxu0 %vm1946_vm0, %v1945_v0  ;;  %1685 = vmatpush3.bf16.msra.mxu1 %v1738_v16 }
 0x9a3   :  { %1698 = vmatprep.subr.bf16.mxu1 %v1945_v0  ;;  %1691 = vmatpush3.bf16.msra.mxu0 %v1740_v54 }
 0x9a4   :  { %1692 = vmatprep.subr.bf16.mxu0 %v1945_v0 }
 0x9a7   :  { %1693 = vmatpush3.bf16.msra.mxu0 %v1741_v55 }
 0xa5d   :  { %v1060_v17 = vpop.f32.mrf.mxu1 }
 0xa5e   :  { %v1530_v18 = vpack.c.bf16 %v1060_v17, %v1060_v17 }
 0xa5f   :  { %v1674_v19 = vpop.f32.mrf.mxu1 }
 0xa60   :  { %1120 = vrot.lane.b32.xlu0 %v1530_v18, %s1959_s4 }
 0xa61   :  { %v1063_v20 = vpop.f32.mrf.mxu1  ;;  %v1108_v21 = vpop.f32.mrf.mxu0 }
 0xa62   :  { %v1531_v22 = vpack.c.bf16 %v1108_v21, %v1108_v21 }
 0xa63   :  { %v1675_v23 = vpop.f32.mrf.mxu1  ;;  %v1680_v24 = vpop.f32.mrf.mxu0 }
 0xa64   :  { %1122 = vrot.lane.b32.xlu1 %v1531_v22, %s1959_s4 }
 0xa65   :  { %v1111_v25 = vpop.f32.mrf.mxu0 }
 0xa67   :  { %v1681_v26 = vpop.f32.mrf.mxu0 }
 0xad2   :  { %v1121_v27 = vpop.permute.xlu0 %1120 }
 0xad3   :  { %1127 = vst.msk [vmem:[#allocation2] sm:$0xf] %vm1126_vm7, %v1121_v27 }
 0xad6   :  { %v1123_v28 = vpop.permute.xlu1 %1122 }
 0xad7   :  { %1128 = vst.msk [vmem:[#allocation2 + $0x4] sm:$0xf] %vm1126_vm7, %v1123_v28 }
 0xade   :  { %v1739_v29 = vld [vmem:[#allocation2] sm:$0xff]  }
 0xadf   :  { %1687 = vmatmul.mubr.msk.bf16.vlgmr.msra.gmra.mxu1 %vm146_vm1, %v1739_v29 }
 0xae0   :  { %1706 = vmatprep.mubr.msk.bf16.mxu1 %vm1946_vm0, %v1945_v0  ;;  %1699 = vmatpush3.bf16.msra.mxu1 %v1742_v56 }
 0xae1   :  { %1700 = vmatprep.subr.bf16.mxu1 %v1945_v0 }
 0xae4   :  { %1701 = vmatpush3.bf16.msra.mxu1 %v1743_v10 }
 0xae5   :  { %1702 = vmatprep.subr.bf16.mxu1 %v1945_v0 }
 0xae8   :  { %1703 = vmatpush3.bf16.msra.mxu1 %v1744_v11 }
 0xae9   :  { %1704 = vmatprep.subr.bf16.mxu1 %v1945_v0  ;;  %v1516_v0 = vld [vmem:[%s2279_s10] ss:$0 sm:$0xff] }
 0xaec   :  { %1705 = vmatpush3.bf16.msra.mxu1 %v1745_v13 }
 0xb9f   :  { %v1196_v32 = vpop.f32.mrf.mxu1 }
 0xba0   :  { %v1197_v33 = vadd.f32 %v1505_v30, %v1196_v32 }
 0xba1   :  { %v1688_v34 = vpop.f32.mrf.mxu1 }
 0xba2   :  { %v1203_v35 = vadd.f32 %v1197_v33, %v120_v31 }
 0xba3   :  { %v1199_v37 = vpop.f32.mrf.mxu1 }
 0xba4   :  { %v1200_v38 = vadd.f32 %v1505_v30, %v1199_v37  ;;  %v1205_v39 = vsel %vm146_vm1, %v1203_v35, 0.0 }
 0xba5   :  { %v1689_v40 = vpop.f32.mrf.mxu1  ;;  %1206 = vadd.xlane.f32.xlu0 %v1205_v39 }
 0xba6   :  { %v1204_v41 = vadd.f32 %v1200_v38, %v121_v36 }
 0xba8   :  { %v1208_v42 = vsel %vm146_vm1, %v1204_v41, 0.0 }
 0xba9   :  { %1209 = vadd.xlane.f32.xlu1 %v1208_v42 }
 0xc2e   :  { %v1207_v44 = vpop.xlane.xlu0 %1206 }
 0xc2f   :  { %v1212_v45 = vmul.f32 0.03125, %v1207_v44 }
 0xc31   :  { %v1214_v47 = vsub.f32 %v1203_v35, %v1212_v45 }
 0xc32   :  { %v1210_v48 = vpop.xlane.xlu1 %1209 }
 0xc33   :  { %v1213_v49 = vmul.f32 0.03125, %v1210_v48  ;;  %v1216_v50 = vmul.f32 %v1214_v47, %v1214_v47 }
 0xc35   :  { %v1215_v51 = vsub.f32 %v1204_v41, %v1213_v49  ;;  %v1218_v52 = vsel %vm146_vm1, %v1216_v50, 0.0 }
 0xc36   :  { %1219 = vadd.xlane.f32.xlu0 %v1218_v52  ;;  %v1522_v52 = vld [vmem:[%s2280_s11] ss:$0 sm:$0xff]  ;;  %s1907_s11 = scalar_lea.vmem %s1462_s17, 128 }
 0xc37   :  { %v1217_v3 = vmul.f32 %v1215_v51, %v1215_v51  ;;  %p1908_p2 = scmp.ne.s32.totalorder %s1462_s17, %s1907_s11  ;;  %p1913_p4 = scmp.lt.s32.totalorder %s1907_s11, %s1907_s11 }
 0xc39   :  { %v1221_v53 = vsel %vm146_vm1, %v1217_v3, 0.0  ;;  %p1914_p5 = por %p1913_p4, %p1912_p3 }
 0xc3a   :  { %1222 = vadd.xlane.f32.xlu0 %v1221_v53  ;;  %v1523_v53 = vld [vmem:[%s2281_s12] ss:$0 sm:$0xff] }
 0xc3b   :  { %p1915_p6 = pnand %p1914_p5, %p1908_p2 }
 0xcbf   :  { %v1220_v57 = vpop.xlane.xlu0 %1219 }
 0xcc0   :  { %v1224_v8 = vmul.f32 0.03125, %v1220_v57 }
 0xcc2   :  { %v1226_v43 = vadd.f32 1e-05, %v1224_v8 }
 0xcc3   :  { %v1223_v46 = vpop.xlane.xlu0 %1222 }
 0xcc4   :  { %1779 = vrsqrt.f32 %v1226_v43  ;;  %v1225_v58 = vmul.f32 0.03125, %v1223_v46 }
 0xcc6   :  { %v1227_v59 = vadd.f32 1e-05, %v1225_v58 }
 0xcc8   :  { %1781 = vrsqrt.f32 %v1227_v59 }
 0xcd1   :  { %v1780_v60 = vpop.eup %1779 }
 0xcd2   :  { %v1230_v61 = vmul.f32 %v1780_v60, %v1214_v47 }
 0xcd4   :  { %v1239_v2 = vmul.f32 %v1510_v62, %v1230_v61 }
 0xcd5   :  { %v1782_v63 = vpop.eup %1781 }
 0xcd6   :  { %v1231_v1 = vmul.f32 %v1782_v63, %v1215_v51  ;;  %v1248_v6 = vadd.f32 %v1511_v4, %v1239_v2 }
 0xcd8   :  { %v1240_v5 = vmul.f32 %v1510_v62, %v1231_v1 }
 0xcda   :  { %v1249_v7 = vadd.f32 %v1511_v4, %v1240_v5 }
 0xcdc   :  { %v1250_v9 = vpack.c.bf16 %v1249_v7, %v1248_v6 }
 0xcde   :  { %1695 = vmatmul.mubr.msk.bf16.vlgmr.msra.gmra.mxu0 %vm146_vm1, %v1250_v9 }
 0xd9e   :  { %v1311_v14 = vpop.f32.mrf.mxu0 }
 0xd9f   :  { %v1312_v16 = vadd.f32 %v1512_v12, %v1311_v14 }
 0xda0   :  { %v1696_v15 = vpop.f32.mrf.mxu0 }
 0xda1   :  { %v1318_v20 = vmax.f32 %v1312_v16, 0.0 }
 0xda2   :  { %v1314_v17 = vpop.f32.mrf.mxu0 }
 0xda3   :  { %v1315_v18 = vadd.f32 %v1512_v12, %v1314_v17 }
 0xda4   :  { %v1697_v19 = vpop.f32.mrf.mxu0 }
 0xda5   :  { %v1319_v21 = vmax.f32 %v1315_v18, 0.0 }
 0xda7   :  { %v1320_v22 = vpack.c.bf16 %v1319_v21, %v1318_v20 }
 0xda9   :  { %1707 = vmatmul.mubr.msk.bf16.vlgmr.msra.gmra.mxu1 %vm1360_vm8, %v1320_v22 }
 0xe69   :  { %v1398_v23 = vpop.f32.mrf.mxu1 }
 0xe6a   :  { %v1399_v24 = vadd.f32 %v1516_v0, %v1398_v23 }
 0xe6b   :  { %v1708_v25 = vpop.f32.mrf.mxu1 }
 0xe6c   :  { %v1405_v26 = vadd.f32 %v1399_v24, %v1248_v6 }
 0xe6d   :  { %v1401_v27 = vpop.f32.mrf.mxu1 }
 0xe6e   :  { %v1402_v28 = vadd.f32 %v1516_v0, %v1401_v27  ;;  %v1407_v29 = vsel %vm146_vm1, %v1405_v26, 0.0 }
 0xe6f   :  { %1408 = vadd.xlane.f32.xlu1 %v1407_v29  ;;  %v1709_v30 = vpop.f32.mrf.mxu1 }
 0xe70   :  { %v1406_v31 = vadd.f32 %v1402_v28, %v1249_v7 }
 0xe72   :  { %v1410_v32 = vsel %vm146_vm1, %v1406_v31, 0.0 }
 0xe73   :  { %1411 = vadd.xlane.f32.xlu0 %v1410_v32 }
 0xef8   :  { %v1409_v33 = vpop.xlane.xlu1 %1408 }
 0xef9   :  { %v1413_v34 = vmul.f32 0.03125, %v1409_v33 }
 0xefb   :  { %v1415_v35 = vsub.f32 %v1405_v26, %v1413_v34 }
 0xefc   :  { %v1412_v36 = vpop.xlane.xlu0 %1411 }
 0xefd   :  { %v1414_v37 = vmul.f32 0.03125, %v1412_v36  ;;  %v1417_v38 = vmul.f32 %v1415_v35, %v1415_v35 }
 0xeff   :  { %v1416_v39 = vsub.f32 %v1406_v31, %v1414_v37  ;;  %v1419_v40 = vsel %vm146_vm1, %v1417_v38, 0.0 }
 0xf00   :  { %1420 = vadd.xlane.f32.xlu1 %v1419_v40 }
 0xf01   :  { %v1418_v41 = vmul.f32 %v1416_v39, %v1416_v39 }
 0xf03   :  { %v1422_v42 = vsel %vm146_vm1, %v1418_v41, 0.0 }
 0xf04   :  { %1423 = vadd.xlane.f32.xlu0 %v1422_v42 }
 0xf89   :  { %v1421_v44 = vpop.xlane.xlu1 %1420 }
 0xf8a   :  { %v1425_v45 = vmul.f32 0.03125, %v1421_v44 }
 0xf8c   :  { %v1427_v47 = vadd.f32 1e-05, %v1425_v45 }
 0xf8d   :  { %v1424_v48 = vpop.xlane.xlu0 %1423 }
 0xf8e   :  { %1783 = vrsqrt.f32 %v1427_v47  ;;  %v1426_v49 = vmul.f32 0.03125, %v1424_v48 }
 0xf90   :  { %v1428_v50 = vadd.f32 1e-05, %v1426_v49 }
 0xf92   :  { %1785 = vrsqrt.f32 %v1428_v50 }
 0xf9b   :  { %v1784_v51 = vpop.eup %1783 }
 0xf9c   :  { %v1431_v3 = vmul.f32 %v1784_v51, %v1415_v35 }
 0xf9e   :  { %v1440_v54 = vmul.f32 %v1522_v52, %v1431_v3 }
 0xf9f   :  { %v1786_v55 = vpop.eup %1785 }
 0xfa0   :  { %v1432_v56 = vmul.f32 %v1786_v55, %v1416_v39  ;;  %v1449_v57 = vadd.f32 %v1523_v53, %v1440_v54 }
 0xfa2   :  { %v1441_v8 = vmul.f32 %v1522_v52, %v1432_v56  ;;  %v1451_v43 = vpack.c.bf16 %v1449_v57, %v1449_v57 }
 0xfa4   :  { %v1450_v46 = vadd.f32 %v1523_v53, %v1441_v8  ;;  %1454 = vst.msk [vmem:[#allocation14] sm:$0xf] %vm1453_vm9, %v1451_v43 }
 0xfa6   :  { %v1452_v58 = vpack.c.bf16 %v1450_v46, %v1450_v46 }
 0xfa8   :  { %1455 = vst.msk [vmem:[#allocation14 + $0x4] sm:$0xf] %vm1453_vm9, %v1452_v58 }
 0xfa9   :  { %1918 = shalt.err (!%p1915_p6)
}
 0xfaa   :  { %1467 = dma.vmem_to_hbm [thread:$0]  %s1462_s17, 128, %s2282_s13, [#allocation5], %s1940_s2, %s1940_s2, %s1941_s23  }
 0xfab   :  { %1935 = dma.done.wait [#allocation5], 128  }
 0xfac   :  { %1936 = vsyncadd [#allocation5], 4294967168 }
 0xfad   :  { %1471 = vsyncpa [#allocation4], 1 }
 0xfae   :  { %1472 = vsyncpa [#allocation7], 1 }
 0xfaf   :  { %1473 = vsyncpa [#allocation10], 1 }
 0xfb0   :  { %1474 = vsyncpa [#allocation13], 1 }
 0xfb1   :  { %1475 = vsyncpa [#allocation5], 1 }

</bundles_post_ra>
